<compile_context>
chip_gen: v7x
topology: tpu7x:2x2x1
jax: 0.10.0
libtpu: 0.0.40
codegen_flags: <defaults>
</compile_context>

<pallas_src>
import math

import jax
import jax.numpy as jnp
from jax.experimental import pallas as pl
from jax.experimental.pallas import tpu as pltpu

_BN_EPS = 1e-5
_TM = 512                        # M tile for GEMM / normalize kernels (clamped to M)
_TM_POOL = 512                   # M tile for the max-pool kernel
_VMEM_LIMIT = 32 * 1024 * 1024   # explicit scoped-VMEM budget, safe on v5e/v6e/v7x


def _round_up(x, m):
    return ((x + m - 1) // m) * m


def _vmem():
    return pl.BlockSpec(memory_space=pltpu.MemorySpace.VMEM)


def _smem():
    return pl.BlockSpec(memory_space=pltpu.MemorySpace.SMEM)


def _pick_tk(k_pad):
    for t in (512, 256, 128):
        if k_pad % t == 0:
            return t
    return 128


# ----------------------------------------------------------------------------- kernels

def _gemm_stats_kernel(p_ref, w_ref, y_ref, s_ref):
    """Tiled bf16 GEMM with f32 accumulation into the resident output block.

    On the last K step also emits per-M-tile column sum / sum-of-squares
    (rows 0 / 1 of an (1, 8, C) stats block) for the BatchNorm reduction.
    """
    k = pl.program_id(1)

    @pl.when(k == 0)
    def _():
        y_ref[...] = jnp.zeros_like(y_ref)

    y_ref[...] += jnp.dot(p_ref[...], w_ref[...],
                          preferred_element_type=jnp.float32)

    @pl.when(k == pl.num_programs(1) - 1)
    def _():
        y = y_ref[...]
        cs = jnp.sum(y, axis=0, keepdims=True)         # (1, C)
        cq = jnp.sum(y * y, axis=0, keepdims=True)     # (1, C)
        row = jax.lax.broadcasted_iota(jnp.int32, s_ref.shape, 1)
        s_ref[...] = jnp.where(row == 0, cs[None],
                               jnp.where(row == 1, cq[None], 0.0))


def _bn_finalize_kernel(cnt_ref, s_ref, g_ref, b_ref, scale_ref, shift_ref):
    """Cross-tile BN stat reduction -> per-channel scale / shift (tiny)."""
    inv = cnt_ref[0, 0]                                # 1 / M (true row count)
    tot = jnp.sum(s_ref[...], axis=0)                  # (8, C): row0=sum, row1=sumsq
    mean = tot[0:1, :] * inv
    ex2 = tot[1:2, :] * inv
    var = jnp.maximum(ex2 - mean * mean, 0.0)
    scale = g_ref[...] * jax.lax.rsqrt(var + _BN_EPS)
    scale_ref[...] = scale
    shift_ref[...] = b_ref[...] - mean * scale


def _norm_affine_kernel(y_ref, sc_ref, sh_ref, o_ref):
    o_ref[...] = (y_ref[...] * sc_ref[...] + sh_ref[...]).astype(o_ref.dtype)


def _norm_affine_relu_kernel(y_ref, sc_ref, sh_ref, o_ref):
    v = y_ref[...] * sc_ref[...] + sh_ref[...]
    o_ref[...] = jnp.maximum(v, 0.0).astype(o_ref.dtype)


def _norm_affine_add_relu_kernel(y_ref, sc_ref, sh_ref, r_ref, o_ref):
    v = y_ref[...] * sc_ref[...] + sh_ref[...] + r_ref[...].astype(jnp.float32)
    o_ref[...] = jnp.maximum(v, 0.0).astype(o_ref.dtype)


def _maxpool_kernel(x_ref, o_ref, acc_ref):
    """Max over the 3x3 taps; tap index is the (arbitrary) reduction grid axis."""
    t = pl.program_id(1)

    @pl.when(t == 0)
    def _():
        acc_ref[...] = jnp.full_like(acc_ref, -jnp.inf)

    acc_ref[...] = jnp.maximum(acc_ref[...], x_ref[0].astype(jnp.float32))

    @pl.when(t == pl.num_programs(1) - 1)
    def _():
        o_ref[...] = acc_ref[...].astype(o_ref.dtype)


def _avgpool_kernel(x_ref, o_ref):
    # x: (N, H*W, C) -> mean over spatial (AdaptiveAvgPool2d((1,1)))
    o_ref[...] = jnp.mean(x_ref[...].astype(jnp.float32), axis=1)


# ----------------------------------------------------------------------------- glue

def _im2col(x, kh, kw, stride, pad):
    # x: (N, H, W, C) bf16 -> (N*Ho*Wo, kh*kw*C)
    n, h, w, c = x.shape
    xp = jnp.pad(x, ((0, 0), (pad, pad), (pad, pad), (0, 0)))
    hp, wp = h + 2 * pad, w + 2 * pad
    ho = (hp - kh) // stride + 1
    wo = (wp - kw) // stride + 1
    taps = []
    for i in range(kh):
        for j in range(kw):
            taps.append(xp[:, i:i + stride * ho:stride, j:j + stride * wo:stride, :])
    patches = jnp.stack(taps, axis=3)                  # (N, Ho, Wo, kh*kw, C)
    return patches.reshape(n * ho * wo, kh * kw * c), ho, wo


def _conv_bn(x, p, stride, pad, relu, residual=None):
    """conv (no bias) -> train-mode BatchNorm -> [+residual] -> [ReLU]; bf16 output."""
    kh, kw = p["k"]
    n = x.shape[0]
    cout = p["w"].shape[1]
    patches, ho, wo = _im2col(x, kh, kw, stride, pad)
    m, k = patches.shape

    tm = min(_TM, _round_up(m, 8))
    m_pad = _round_up(m, tm)
    k_pad = _round_up(k, 128)
    tk = _pick_tk(k_pad)
    m_tiles, k_tiles = m_pad // tm, k_pad // tk

    # explicit zero padding (padded rows/cols contribute exactly 0 to GEMM and BN sums)
    patches = jnp.pad(patches, ((0, m_pad - m), (0, k_pad - k)))
    w = jnp.pad(p["w"].astype(jnp.bfloat16), ((0, k_pad - k), (0, 0)))

    # (1) tiled bf16 GEMM + per-tile BN partial statistics
    y, stats = pl.pallas_call(
        _gemm_stats_kernel,
        grid=(m_tiles, k_tiles),
        in_specs=[
            pl.BlockSpec((tm, tk), lambda i, kk: (i, kk)),
            pl.BlockSpec((tk, cout), lambda i, kk: (kk, 0)),
        ],
        out_specs=(
            pl.BlockSpec((tm, cout), lambda i, kk: (i, 0)),
            pl.BlockSpec((1, 8, cout), lambda i, kk: (i, 0, 0)),
        ),
        out_shape=(
            jax.ShapeDtypeStruct((m_pad, cout), jnp.float32),
            jax.ShapeDtypeStruct((m_tiles, 8, cout), jnp.float32),
        ),
        compiler_params=pltpu.CompilerParams(
            dimension_semantics=("parallel", "arbitrary"),
            vmem_limit_bytes=_VMEM_LIMIT),
    )(patches, w)

    # (2) tiny stat finalize -> per-channel scale / shift
    inv_count = jnp.full((1, 1), 1.0 / m, jnp.float32)
    scale, shift = pl.pallas_call(
        _bn_finalize_kernel,
        in_specs=[_smem(), _vmem(), _vmem(), _vmem()],
        out_specs=(_vmem(), _vmem()),
        out_shape=(
            jax.ShapeDtypeStruct((1, cout), jnp.float32),
            jax.ShapeDtypeStruct((1, cout), jnp.float32),
        ),
    )(inv_count, stats, p["gamma"], p["beta"])

    # (3) tiled normalize + affine (+ residual add) (+ ReLU), bf16 output
    operands = [y, scale, shift]
    in_specs = [
        pl.BlockSpec((tm, cout), lambda i: (i, 0)),
        pl.BlockSpec((1, cout), lambda i: (0, 0)),
        pl.BlockSpec((1, cout), lambda i: (0, 0)),
    ]
    if residual is not None:
        res = jnp.pad(residual.reshape(-1, cout), ((0, m_pad - m), (0, 0)))
        operands.append(res)
        in_specs.append(pl.BlockSpec((tm, cout), lambda i: (i, 0)))
        kern = _norm_affine_add_relu_kernel
    else:
        kern = _norm_affine_relu_kernel if relu else _norm_affine_kernel

    out = pl.pallas_call(
        kern,
        grid=(m_tiles,),
        in_specs=in_specs,
        out_specs=pl.BlockSpec((tm, cout), lambda i: (i, 0)),
        out_shape=jax.ShapeDtypeStruct((m_pad, cout), jnp.bfloat16),
        compiler_params=pltpu.CompilerParams(
            dimension_semantics=("parallel",),
            vmem_limit_bytes=_VMEM_LIMIT),
    )(*operands)
    return out[:m].reshape(n, ho, wo, cout)


def _maxpool_3x3_s2(x):
    n, h, w, c = x.shape
    pad, kk, stride = 1, 3, 2
    xp = jnp.pad(x, ((0, 0), (pad, pad), (pad, pad), (0, 0)),
                 constant_values=-jnp.inf)
    hp, wp = h + 2 * pad, w + 2 * pad
    ho = (hp - kk) // stride + 1
    wo = (wp - kk) // stride + 1
    taps = []
    for i in range(kk):
        for j in range(kk):
            taps.append(xp[:, i:i + stride * ho:stride, j:j + stride * wo:stride, :])
    m = n * ho * wo
    stacked = jnp.stack(taps, axis=0).reshape(kk * kk, m, c)

    tm = min(_TM_POOL, _round_up(m, 8))
    m_pad = _round_up(m, tm)
    stacked = jnp.pad(stacked, ((0, 0), (0, m_pad - m), (0, 0)))
    m_tiles = m_pad // tm

    out = pl.pallas_call(
        _maxpool_kernel,
        grid=(m_tiles, kk * kk),
        in_specs=[pl.BlockSpec((1, tm, c), lambda i, t: (t, i, 0))],
        out_specs=pl.BlockSpec((tm, c), lambda i, t: (i, 0)),
        out_shape=jax.ShapeDtypeStruct((m_pad, c), x.dtype),
        scratch_shapes=[pltpu.VMEM((tm, c), jnp.float32)],
        compiler_params=pltpu.CompilerParams(
            dimension_semantics=("parallel", "arbitrary"),
            vmem_limit_bytes=_VMEM_LIMIT),
    )(stacked)
    return out[:m].reshape(n, ho, wo, c)


def _basic_block(x, blk):
    s = blk["stride"]
    out = _conv_bn(x, blk["conv1"], stride=s, pad=1, relu=True)
    if "down" in blk:
        identity = _conv_bn(x, blk["down"], stride=s, pad=0, relu=False)
    else:
        identity = x
    # conv2 + bn2 + residual add + ReLU fused into one normalize pass
    return _conv_bn(out, blk["conv2"], stride=1, pad=1, relu=True,
                    residual=identity)


# ----------------------------------------------------------------------------- params

def _conv_params(key, cin, cout, k):
    fan_in = k * k * cin
    w = jax.random.normal(key, (fan_in, cout), jnp.float32) * math.sqrt(2.0 / fan_in)
    return {
        "w": w,
        "gamma": jnp.ones((1, cout), jnp.float32),
        "beta": jnp.zeros((1, cout), jnp.float32),
        "k": (k, k),
    }


def init_resnet34_params(key):
    counter = [0]

    def nk():
        counter[0] += 1
        return jax.random.fold_in(key, counter[0])

    params = {"conv1": _conv_params(nk(), 3, 64, 7)}
    stages = []
    cin = 64
    # ResNet-34: (channels, num_blocks, first_stride)
    for cout, nblocks, stride in [(64, 3, 1), (128, 4, 2), (256, 6, 2), (512, 3, 2)]:
        blocks = []
        for b in range(nblocks):
            s = stride if b == 0 else 1
            blk = {
                "conv1": _conv_params(nk(), cin, cout, 3),
                "conv2": _conv_params(nk(), cout, cout, 3),
                "stride": s,
            }
            if s != 1 or cin != cout:
                blk["down"] = _conv_params(nk(), cin, cout, 1)
            blocks.append(blk)
            cin = cout
        stages.append(blocks)
    params["stages"] = stages
    return params


# ----------------------------------------------------------------------------- forward

def simclr_forward(params, x_nchw):
    """x_nchw: (N, 3, H, W) float32  ->  (N, 512) float32 (backbone + flatten)."""
    x = jnp.transpose(x_nchw, (0, 2, 3, 1)).astype(jnp.bfloat16)    # NCHW -> NHWC bf16
    x = _conv_bn(x, params["conv1"], stride=2, pad=3, relu=True)    # conv1 + bn1 + relu
    x = _maxpool_3x3_s2(x)                                          # maxpool 3x3/s2
    for blocks in params["stages"]:                                 # layer1..layer4
        for blk in blocks:
            x = _basic_block(x, blk)
    n, h, w, c = x.shape
    feat = pl.pallas_call(                                          # AdaptiveAvgPool2d((1,1))
        _avgpool_kernel,
        out_shape=jax.ShapeDtypeStruct((n, c), jnp.float32),
        in_specs=[_vmem()],
        out_specs=_vmem(),
    )(x.reshape(n, h * w, c))
    return feat                                                     # .flatten(start_dim=1)


if __name__ == "__main__":
    key = jax.random.PRNGKey(0)
    x = jax.random.normal(key, (2, 3, 32, 32), jnp.float32)  # NCHW, like PyTorch
    params = init_resnet34_params(jax.random.PRNGKey(42))

    out = simclr_forward(params, x)
    out = jax.block_until_ready(out)

    assert out.shape == (2, 512), out.shape
    assert jnp.all(jnp.isfinite(out))
    print("KERNEL_OK")
</pallas_src>

<mosaic_0001>
module attributes {stable_mosaic.version = 11 : i64} {
  func.func @_gemm_stats_kernel(%arg0: i32, %arg1: i32, %arg2: memref<512x256xbf16, #tpu.memory_space<vmem>>, %arg3: memref<256x64xbf16, #tpu.memory_space<vmem>>, %arg4: memref<512x64xf32, #tpu.memory_space<vmem>>, %arg5: memref<1x8x64xf32, #tpu.memory_space<vmem>>) attributes {dimension_semantics = [#tpu.dimension_semantics<parallel>, #tpu.dimension_semantics<arbitrary>], iteration_bounds = array<i64: 1, 1>, scalar_prefetch = 0 : i64, scratch_operands = 0 : i64, tpu.core_type = #tpu.core_type<tc>, window_params = [{transform_indices = @transform_0, window_bounds = array<i64: 512, 256>}, {transform_indices = @transform_1, window_bounds = array<i64: 256, 64>}, {transform_indices = @transform_2, window_bounds = array<i64: 512, 64>}, {transform_indices = @transform_3, window_bounds = array<i64: 1, 8, 64>}]} {
    %c0_i32 = arith.constant 0 : i32
    %0 = arith.cmpi eq, %arg1, %c0_i32 : i32
    %1 = arith.extui %0 : i1 to i32
    %c0_i32_0 = arith.constant 0 : i32
    %2 = arith.cmpi ne, %1, %c0_i32_0 : i32
    scf.if %2 {
      %cst_10 = arith.constant 0.000000e+00 : f32
      %12 = vector.broadcast %cst_10 : f32 to vector<512x64xf32>
      %c0_11 = arith.constant 0 : index
      %c0_12 = arith.constant 0 : index
      %13 = vector.load %arg4[%c0_11, %c0_12] : memref<512x64xf32, #tpu.memory_space<vmem>>, vector<512x64xf32>
      tpu.vector_store %arg4[%c0_11, %c0_12], %12 {strides = array<i32>} : memref<512x64xf32, #tpu.memory_space<vmem>>, vector<512x64xf32>,
    } else {
    }
    %c0 = arith.constant 0 : index
    %c0_1 = arith.constant 0 : index
    %3 = vector.load %arg4[%c0, %c0_1] : memref<512x64xf32, #tpu.memory_space<vmem>>, vector<512x64xf32>
    %c0_2 = arith.constant 0 : index
    %c0_3 = arith.constant 0 : index
    %4 = vector.load %arg2[%c0_2, %c0_3] : memref<512x256xbf16, #tpu.memory_space<vmem>>, vector<512x256xbf16>
    %c0_4 = arith.constant 0 : index
    %c0_5 = arith.constant 0 : index
    %5 = vector.load %arg3[%c0_4, %c0_5] : memref<256x64xbf16, #tpu.memory_space<vmem>>, vector<256x64xbf16>
    %cst = arith.constant dense<0.000000e+00> : vector<512x64xf32>
    %6 = tpu.matmul %4, %5, %cst {dimension_numbers = #tpu.dot_dimension_numbers<[1], [0], [0], [1], [0, 0, 1, 1], [], []>} : vector<512x256xbf16>, vector<256x64xbf16>, vector<512x64xf32> -> vector<512x64xf32>
    %7 = arith.addf %3, %6 : vector<512x64xf32>
    %c0_6 = arith.constant 0 : index
    %c0_7 = arith.constant 0 : index
    %8 = vector.load %arg4[%c0_6, %c0_7] : memref<512x64xf32, #tpu.memory_space<vmem>>, vector<512x64xf32>
    tpu.vector_store %arg4[%c0_6, %c0_7], %7 {strides = array<i32>} : memref<512x64xf32, #tpu.memory_space<vmem>>, vector<512x64xf32>,
    %c0_i32_8 = arith.constant 0 : i32
    %9 = arith.cmpi eq, %arg1, %c0_i32_8 : i32
    %10 = arith.extui %9 : i1 to i32
    %c0_i32_9 = arith.constant 0 : i32
    %11 = arith.cmpi ne, %10, %c0_i32_9 : i32
    scf.if %11 {
      %c0_10 = arith.constant 0 : index
      %c0_11 = arith.constant 0 : index
      %12 = vector.load %arg4[%c0_10, %c0_11] : memref<512x64xf32, #tpu.memory_space<vmem>>, vector<512x64xf32>
      %cst_12 = arith.constant dense<0.000000e+00> : vector<64xf32>
      %13 = vector.multi_reduction <add>, %12, %cst_12 [0] : vector<512x64xf32> to vector<64xf32>
      %14 = vector.shape_cast %13 : vector<64xf32> to vector<1x64xf32>
      %15 = arith.mulf %12, %12 : vector<512x64xf32>
      %cst_13 = arith.constant dense<0.000000e+00> : vector<64xf32>
      %16 = vector.multi_reduction <add>, %15, %cst_13 [0] : vector<512x64xf32> to vector<64xf32>
      %17 = vector.shape_cast %16 : vector<64xf32> to vector<1x64xf32>
      %18 = tpu.iota {dimensions = array<i32: 1>} : vector<1x8x64xi32>
      %c0_i32_14 = arith.constant 0 : i32
      %19 = vector.broadcast %c0_i32_14 : i32 to vector<1x8x64xi32>
      %20 = arith.cmpi eq, %18, %19 : vector<1x8x64xi32>
      %21 = vector.shape_cast %14 : vector<1x64xf32> to vector<1x1x64xf32>
      %c1_i32 = arith.constant 1 : i32
      %22 = vector.broadcast %c1_i32 : i32 to vector<1x8x64xi32>
      %23 = arith.cmpi eq, %18, %22 : vector<1x8x64xi32>
      %24 = vector.shape_cast %17 : vector<1x64xf32> to vector<1x1x64xf32>
      %cst_15 = arith.constant 0.000000e+00 : f32
      %25 = vector.shape_cast %24 : vector<1x1x64xf32> to vector<1x1x64xf32>
      %26 = vector.broadcast %25 : vector<1x1x64xf32> to vector<1x8x64xf32>
      %27 = vector.broadcast %cst_15 : f32 to vector<1x8x64xf32>
      %28 = arith.select %23, %26, %27 : vector<1x8x64xi1>, vector<1x8x64xf32>
      %29 = vector.shape_cast %21 : vector<1x1x64xf32> to vector<1x1x64xf32>
      %30 = vector.broadcast %29 : vector<1x1x64xf32> to vector<1x8x64xf32>
      %31 = arith.select %20, %30, %28 : vector<1x8x64xi1>, vector<1x8x64xf32>
      %c0_16 = arith.constant 0 : index
      %c0_17 = arith.constant 0 : index
      %c0_18 = arith.constant 0 : index
      %32 = vector.load %arg5[%c0_16, %c0_17, %c0_18] : memref<1x8x64xf32, #tpu.memory_space<vmem>>, vector<1x8x64xf32>
      tpu.vector_store %arg5[%c0_16, %c0_17, %c0_18], %31 {strides = array<i32>} : memref<1x8x64xf32, #tpu.memory_space<vmem>>, vector<1x8x64xf32>,
    } else {
    }
    return
  }
  func.func @transform_0(%arg0: i32, %arg1: i32) -> (i32, i32) {
    %c0_i32 = arith.constant 0 : i32
    return %arg0, %arg1 : i32, i32
  }
  func.func @transform_1(%arg0: i32, %arg1: i32) -> (i32, i32) {
    %c0_i32 = arith.constant 0 : i32
    %c0_i32_0 = arith.constant 0 : i32
    return %arg1, %c0_i32 : i32, i32
  }
  func.func @transform_2(%arg0: i32, %arg1: i32) -> (i32, i32) {
    %c0_i32 = arith.constant 0 : i32
    %c0_i32_0 = arith.constant 0 : i32
    return %arg0, %c0_i32 : i32, i32
  }
  func.func @transform_3(%arg0: i32, %arg1: i32) -> (i32, i32, i32) {
    %c0_i32 = arith.constant 0 : i32
    %c0_i32_0 = arith.constant 0 : i32
    %c0_i32_1 = arith.constant 0 : i32
    return %arg0, %c0_i32, %c0_i32_0 : i32, i32, i32
  }
}

</mosaic_0001>

<bundles_post_ra>
// kernel: tpu_custom_call.1
= control target key start
LH: loop header
LB: loop body
LE: loop exit
PB: predicated region body
PF: predicated region fallthrough
CT: control target
= control target key end

     0   :  { %9 = vsyncpa [#allocation3], 0  ;;  %s3024_s0 = inlined_call_operand.hbm [shape: bf16[512,256], index: 0, kind: input, shape index: {}]   ;;  %s3025_s1 = inlined_call_operand.vmem [shape: bf16[256,64], index: 1, kind: input, shape index: {}]   ;;  %s3026_s2 = inlined_call_operand.vmem [shape: f32[512,64], index: 2, kind: output, shape index: {0}]   ;;  %s3027_s3 = inlined_call_operand.hbm [shape: f32[1,8,64], index: 3, kind: output, shape index: {1}]  }
   0x1   :  { %10 = vsyncpa [#allocation4], 0  ;;  %s1793_s12 = smov [#allocation2]   ;;  %s1745_s16 = scalar_lea.hbm %s3024_s0, 8192 }
   0x2   :  { %s16_s13 = sshll.u32 %s1793_s12, 4  ;;  %p1746_p0 = scmp.ne.s32.totalorder %s3024_s0, %s1745_s16  ;;  %s17_s13 = int_to_ptr.vmem [resolvable:$true] %s16_s13 }
   0x3   :  { %p1749_p1 = scmp.lt.u32.totalorder %s1745_s16, %s3024_s0 }
   0x5   :  { %p1751_p2 = pnand %p1749_p1, %p1746_p0 }
   0x7   :  { %1754 = shalt.err (!%p1751_p2)
}
   0x8   :  { %s1755_s21 = scalar_lea.vmem %s17_s13, 8192  ;;  %p1760_p4 = scmp.lt.s32.totalorder %s17_s13, %s17_s13 }
   0x9   :  { %p1756_p3 = scmp.ne.s32.totalorder %s17_s13, %s1755_s21  ;;  %p1761_p5 = scmp.lt.s32.totalorder %s1755_s21, %s1755_s21 }
   0xb   :  { %p1762_p6 = por %p1761_p5, %p1760_p4 }
   0xd   :  { %p1763_p7 = pnand %p1762_p6, %p1756_p3 }
   0xf   :  { %1766 = shalt.err (!%p1763_p7)
}
  0x10   :  { %s1794_s22 = smov 128   ;;  %s1795_s23 = smov 8  }
  0x11   :  { %22 = dma.hbm_to_vmem [thread:$0]  %s3024_s0, 8192, %s17_s13, [#allocation3], %s1794_s22, %s1794_s22, %s1795_s23  }
  0x12   :  { %1789 = dma.done.wait [#allocation3], 8192  }
  0x13   :  { %1790 = vsyncadd [#allocation3], 4294959104  ;;  %v1796_v0 = vmov 0   ;;  %v1633_v1 = vld [vmem:[%s3025_s1] sm:$0xff]   ;;  %v1634_v2 = vld [vmem:[%s3025_s1 + $0x8] sm:$0xff]   ;;  %vm33_vm0 = vcmask 523264  }
  0x14   :  { %674 = vmatprep.subr.bf16.mxu0 %v1796_v0  ;;  %1595 = vmatprep.subr.bf16.mxu1 %v1796_v0  ;;  %v1635_v3 = vld [vmem:[%s3025_s1 + $0x10] sm:$0xff]   ;;  %v1636_v4 = vld [vmem:[%s3025_s1 + $0x18] sm:$0xff]   ;;  %v1637_v5 = vld [vmem:[%s3025_s1 + $0x20] sm:$0xff]   ;;  %v1797_v23 = vmov 0.0  }
  0x15   :  { %675 = vmatpush1.bf16.msra.mxu0 %v1633_v1  ;;  %1611 = vmatpush1.bf16.msra.mxu1 %v1633_v1  ;;  %v1651_v6 = vld [vmem:[#allocation2 + $0x4] ss:$8 sps:$4 sm:$0xff]   ;;  %v1639_v8 = vld [vmem:[%s3025_s1 + $0x30] sm:$0xff]   ;;  %v1640_v9 = vld [vmem:[%s3025_s1 + $0x38] sm:$0xff]   ;;  %34 = vst.msk [vmem:[%s3026_s2] sm:$0xff] %vm33_vm0, %v1797_v23 }
  0x16   :  { %676 = vmatprep.subr.bf16.mxu0 %v1796_v0  ;;  %1596 = vmatprep.subr.bf16.mxu1 %v1796_v0  ;;  %v1638_v7 = vld [vmem:[%s3025_s1 + $0x28] sm:$0xff]   ;;  %v1641_v11 = vld [vmem:[%s3025_s1 + $0x40] sm:$0xff]   ;;  %v1643_v13 = vld [vmem:[%s3025_s1 + $0x50] sm:$0xff]   ;;  %35 = vst.msk [vmem:[%s3026_s2 + $0x8] sm:$0xff] %vm33_vm0, %v1797_v23 }
  0x17   :  { %706 = vmatprep.mubr.bf16.mxu0 %v1651_v6  ;;  %v1675_v10 = vld [vmem:[#allocation2 + $0x104] ss:$8 sps:$4 sm:$0xff]   ;;  %v1644_v14 = vld [vmem:[%s3025_s1 + $0x58] sm:$0xff]   ;;  %v1647_v17 = vld [vmem:[%s3025_s1 + $0x70] sm:$0xff]   ;;  %36 = vst.msk [vmem:[%s3026_s2 + $0x10] sm:$0xff] %vm33_vm0, %v1797_v23 }
  0x18   :  { %834 = vmatprep.mubr.bf16.mxu1 %v1675_v10  ;;  %v1642_v12 = vld [vmem:[%s3025_s1 + $0x48] sm:$0xff]   ;;  %v1645_v15 = vld [vmem:[%s3025_s1 + $0x60] sm:$0xff]   ;;  %v1648_v18 = vld [vmem:[%s3025_s1 + $0x78] sm:$0xff]   ;;  %37 = vst.msk [vmem:[%s3026_s2 + $0x18] sm:$0xff] %vm33_vm0, %v1797_v23 }
  0x19   :  { %677 = vmatpush1.bf16.msra.mxu0 %v1634_v2  ;;  %1612 = vmatpush1.bf16.msra.mxu1 %v1634_v2  ;;  %v1646_v16 = vld [vmem:[%s3025_s1 + $0x68] sm:$0xff]   ;;  %v1915_v21 = vld [vmem:[#allocation2 + $0x14] ss:$8 sps:$4 sm:$0xff]   ;;  %38 = vst.msk [vmem:[%s3026_s2 + $0x20] sm:$0xff] %vm33_vm0, %v1797_v23  ;;  %39 = vst.msk [vmem:[%s3026_s2 + $0x28] sm:$0xff] %vm33_vm0, %v1797_v23 }
  0x1a   :  { %678 = vmatprep.subr.bf16.mxu0 %v1796_v0  ;;  %1597 = vmatprep.subr.bf16.mxu1 %v1796_v0  ;;  %v1911_v19 = vld [vmem:[#allocation2] ss:$8 sps:$4 sm:$0xff]   ;;  %v1917_v22 = vld [vmem:[#allocation2 + $0x114] ss:$8 sps:$4 sm:$0xff]   ;;  %40 = vst.msk [vmem:[%s3026_s2 + $0x30] sm:$0xff] %vm33_vm0, %v1797_v23  ;;  %41 = vst.msk [vmem:[%s3026_s2 + $0x38] sm:$0xff] %vm33_vm0, %v1797_v23 }
  0x1b   :  { %v1913_v20 = vld [vmem:[#allocation2 + $0x100] ss:$8 sps:$4 sm:$0xff]   ;;  %42 = vst.msk [vmem:[%s3026_s2 + $0x40] sm:$0xff] %vm33_vm0, %v1797_v23  ;;  %43 = vst.msk [vmem:[%s3026_s2 + $0x48] sm:$0xff] %vm33_vm0, %v1797_v23  ;;  %v1654_v24 = vld [vmem:[#allocation2 + $0x10] ss:$8 sps:$4 sm:$0xff]  }
  0x1c   :  { %44 = vst.msk [vmem:[%s3026_s2 + $0x50] sm:$0xff] %vm33_vm0, %v1797_v23  ;;  %45 = vst.msk [vmem:[%s3026_s2 + $0x58] sm:$0xff] %vm33_vm0, %v1797_v23  ;;  %v1681_v25 = vld [vmem:[#allocation2 + $0x110] ss:$8 sps:$4 sm:$0xff]   ;;  %v1655_v26 = vld [vmem:[#allocation2 + $0x24] ss:$8 sps:$4 sm:$0xff]  }
  0x1d   :  { %679 = vmatpush1.bf16.msra.mxu0 %v1635_v3  ;;  %1613 = vmatpush1.bf16.msra.mxu1 %v1635_v3  ;;  %46 = vst.msk [vmem:[%s3026_s2 + $0x60] sm:$0xff] %vm33_vm0, %v1797_v23  ;;  %47 = vst.msk [vmem:[%s3026_s2 + $0x68] sm:$0xff] %vm33_vm0, %v1797_v23  ;;  %v1685_v27 = vld [vmem:[#allocation2 + $0x124] ss:$8 sps:$4 sm:$0xff]   ;;  %v1657_v28 = vld [vmem:[#allocation2 + $0x20] ss:$8 sps:$4 sm:$0xff]  }
  0x1e   :  { %680 = vmatprep.subr.bf16.mxu0 %v1796_v0  ;;  %1598 = vmatprep.subr.bf16.mxu1 %v1796_v0  ;;  %48 = vst.msk [vmem:[%s3026_s2 + $0x70] sm:$0xff] %vm33_vm0, %v1797_v23  ;;  %49 = vst.msk [vmem:[%s3026_s2 + $0x78] sm:$0xff] %vm33_vm0, %v1797_v23  ;;  %v1687_v29 = vld [vmem:[#allocation2 + $0x120] ss:$8 sps:$4 sm:$0xff]   ;;  %v1658_v30 = vld [vmem:[#allocation2 + $0x34] ss:$8 sps:$4 sm:$0xff]  }
  0x1f   :  { %50 = vst.msk [vmem:[%s3026_s2 + $0x80] sm:$0xff] %vm33_vm0, %v1797_v23  ;;  %51 = vst.msk [vmem:[%s3026_s2 + $0x88] sm:$0xff] %vm33_vm0, %v1797_v23  ;;  %v1691_v31 = vld [vmem:[#allocation2 + $0x134] ss:$8 sps:$4 sm:$0xff]   ;;  %v1660_v32 = vld [vmem:[#allocation2 + $0x30] ss:$8 sps:$4 sm:$0xff]  }
  0x20   :  { %52 = vst.msk [vmem:[%s3026_s2 + $0x90] sm:$0xff] %vm33_vm0, %v1797_v23  ;;  %53 = vst.msk [vmem:[%s3026_s2 + $0x98] sm:$0xff] %vm33_vm0, %v1797_v23  ;;  %v1693_v33 = vld [vmem:[#allocation2 + $0x130] ss:$8 sps:$4 sm:$0xff]   ;;  %v1661_v34 = vld [vmem:[#allocation2 + $0x44] ss:$8 sps:$4 sm:$0xff]  }
  0x21   :  { %681 = vmatpush1.bf16.msra.mxu0 %v1636_v4  ;;  %1614 = vmatpush1.bf16.msra.mxu1 %v1636_v4  ;;  %54 = vst.msk [vmem:[%s3026_s2 + $0xa0] sm:$0xff] %vm33_vm0, %v1797_v23  ;;  %55 = vst.msk [vmem:[%s3026_s2 + $0xa8] sm:$0xff] %vm33_vm0, %v1797_v23  ;;  %v1697_v35 = vld [vmem:[#allocation2 + $0x144] ss:$8 sps:$4 sm:$0xff]   ;;  %v1663_v36 = vld [vmem:[#allocation2 + $0x40] ss:$8 sps:$4 sm:$0xff]  }
  0x22   :  { %682 = vmatprep.subr.bf16.mxu0 %v1796_v0  ;;  %1599 = vmatprep.subr.bf16.mxu1 %v1796_v0  ;;  %56 = vst.msk [vmem:[%s3026_s2 + $0xb0] sm:$0xff] %vm33_vm0, %v1797_v23  ;;  %57 = vst.msk [vmem:[%s3026_s2 + $0xb8] sm:$0xff] %vm33_vm0, %v1797_v23  ;;  %v1699_v37 = vld [vmem:[#allocation2 + $0x140] ss:$8 sps:$4 sm:$0xff]   ;;  %v1664_v38 = vld [vmem:[#allocation2 + $0x54] ss:$8 sps:$4 sm:$0xff]  }
  0x23   :  { %58 = vst.msk [vmem:[%s3026_s2 + $0xc0] sm:$0xff] %vm33_vm0, %v1797_v23  ;;  %59 = vst.msk [vmem:[%s3026_s2 + $0xc8] sm:$0xff] %vm33_vm0, %v1797_v23  ;;  %v1703_v39 = vld [vmem:[#allocation2 + $0x154] ss:$8 sps:$4 sm:$0xff]   ;;  %v1666_v40 = vld [vmem:[#allocation2 + $0x50] ss:$8 sps:$4 sm:$0xff]  }
  0x24   :  { %60 = vst.msk [vmem:[%s3026_s2 + $0xd0] sm:$0xff] %vm33_vm0, %v1797_v23  ;;  %61 = vst.msk [vmem:[%s3026_s2 + $0xd8] sm:$0xff] %vm33_vm0, %v1797_v23  ;;  %v1705_v41 = vld [vmem:[#allocation2 + $0x150] ss:$8 sps:$4 sm:$0xff]   ;;  %v1667_v42 = vld [vmem:[#allocation2 + $0x64] ss:$8 sps:$4 sm:$0xff]  }
  0x25   :  { %683 = vmatpush1.bf16.msra.mxu0 %v1637_v5  ;;  %1615 = vmatpush1.bf16.msra.mxu1 %v1637_v5  ;;  %62 = vst.msk [vmem:[%s3026_s2 + $0xe0] sm:$0xff] %vm33_vm0, %v1797_v23  ;;  %63 = vst.msk [vmem:[%s3026_s2 + $0xe8] sm:$0xff] %vm33_vm0, %v1797_v23  ;;  %v1709_v43 = vld [vmem:[#allocation2 + $0x164] ss:$8 sps:$4 sm:$0xff]   ;;  %v1669_v44 = vld [vmem:[#allocation2 + $0x60] ss:$8 sps:$4 sm:$0xff]  }
  0x26   :  { %684 = vmatprep.subr.bf16.mxu0 %v1796_v0  ;;  %1600 = vmatprep.subr.bf16.mxu1 %v1796_v0  ;;  %64 = vst.msk [vmem:[%s3026_s2 + $0xf0] sm:$0xff] %vm33_vm0, %v1797_v23  ;;  %65 = vst.msk [vmem:[%s3026_s2 + $0xf8] sm:$0xff] %vm33_vm0, %v1797_v23  ;;  %v1711_v45 = vld [vmem:[#allocation2 + $0x160] ss:$8 sps:$4 sm:$0xff]   ;;  %v1670_v46 = vld [vmem:[#allocation2 + $0x74] ss:$8 sps:$4 sm:$0xff]  }
  0x27   :  { %66 = vst.msk [vmem:[%s3026_s2 + $0x100] sm:$0xff] %vm33_vm0, %v1797_v23  ;;  %67 = vst.msk [vmem:[%s3026_s2 + $0x108] sm:$0xff] %vm33_vm0, %v1797_v23  ;;  %v1715_v47 = vld [vmem:[#allocation2 + $0x174] ss:$8 sps:$4 sm:$0xff]   ;;  %v1672_v48 = vld [vmem:[#allocation2 + $0x70] ss:$8 sps:$4 sm:$0xff]  }
  0x28   :  { %68 = vst.msk [vmem:[%s3026_s2 + $0x110] sm:$0xff] %vm33_vm0, %v1797_v23  ;;  %69 = vst.msk [vmem:[%s3026_s2 + $0x118] sm:$0xff] %vm33_vm0, %v1797_v23  ;;  %v1717_v49 = vld [vmem:[#allocation2 + $0x170] ss:$8 sps:$4 sm:$0xff]   ;;  %v1676_v50 = vld [vmem:[#allocation2 + $0x84] ss:$8 sps:$4 sm:$0xff]  }
  0x29   :  { %685 = vmatpush1.bf16.msra.mxu0 %v1638_v7  ;;  %1616 = vmatpush1.bf16.msra.mxu1 %v1638_v7  ;;  %70 = vst.msk [vmem:[%s3026_s2 + $0x120] sm:$0xff] %vm33_vm0, %v1797_v23  ;;  %71 = vst.msk [vmem:[%s3026_s2 + $0x128] sm:$0xff] %vm33_vm0, %v1797_v23  ;;  %v1721_v51 = vld [vmem:[#allocation2 + $0x184] ss:$8 sps:$4 sm:$0xff]   ;;  %v1678_v52 = vld [vmem:[#allocation2 + $0x80] ss:$8 sps:$4 sm:$0xff]  }
  0x2a   :  { %686 = vmatprep.subr.bf16.mxu0 %v1796_v0  ;;  %1601 = vmatprep.subr.bf16.mxu1 %v1796_v0  ;;  %72 = vst.msk [vmem:[%s3026_s2 + $0x130] sm:$0xff] %vm33_vm0, %v1797_v23  ;;  %73 = vst.msk [vmem:[%s3026_s2 + $0x138] sm:$0xff] %vm33_vm0, %v1797_v23  ;;  %v1723_v53 = vld [vmem:[#allocation2 + $0x180] ss:$8 sps:$4 sm:$0xff]   ;;  %v1682_v54 = vld [vmem:[#allocation2 + $0x94] ss:$8 sps:$4 sm:$0xff]  }
  0x2b   :  { %74 = vst.msk [vmem:[%s3026_s2 + $0x140] sm:$0xff] %vm33_vm0, %v1797_v23  ;;  %75 = vst.msk [vmem:[%s3026_s2 + $0x148] sm:$0xff] %vm33_vm0, %v1797_v23  ;;  %v1724_v55 = vld [vmem:[#allocation2 + $0x194] ss:$8 sps:$4 sm:$0xff]   ;;  %v1684_v56 = vld [vmem:[#allocation2 + $0x90] ss:$8 sps:$4 sm:$0xff]  }
  0x2c   :  { %76 = vst.msk [vmem:[%s3026_s2 + $0x150] sm:$0xff] %vm33_vm0, %v1797_v23  ;;  %77 = vst.msk [vmem:[%s3026_s2 + $0x158] sm:$0xff] %vm33_vm0, %v1797_v23  ;;  %v1726_v57 = vld [vmem:[#allocation2 + $0x190] ss:$8 sps:$4 sm:$0xff]   ;;  %v1688_v58 = vld [vmem:[#allocation2 + $0xa4] ss:$8 sps:$4 sm:$0xff]  }
  0x2d   :  { %687 = vmatpush1.bf16.msra.mxu0 %v1639_v8  ;;  %1617 = vmatpush1.bf16.msra.mxu1 %v1639_v8  ;;  %78 = vst.msk [vmem:[%s3026_s2 + $0x160] sm:$0xff] %vm33_vm0, %v1797_v23  ;;  %79 = vst.msk [vmem:[%s3026_s2 + $0x168] sm:$0xff] %vm33_vm0, %v1797_v23  ;;  %v1727_v59 = vld [vmem:[#allocation2 + $0x1a4] ss:$8 sps:$4 sm:$0xff]   ;;  %v1690_v60 = vld [vmem:[#allocation2 + $0xa0] ss:$8 sps:$4 sm:$0xff]  }
  0x2e   :  { %688 = vmatprep.subr.bf16.mxu0 %v1796_v0  ;;  %1602 = vmatprep.subr.bf16.mxu1 %v1796_v0  ;;  %80 = vst.msk [vmem:[%s3026_s2 + $0x170] sm:$0xff] %vm33_vm0, %v1797_v23  ;;  %81 = vst.msk [vmem:[%s3026_s2 + $0x178] sm:$0xff] %vm33_vm0, %v1797_v23  ;;  %v1729_v61 = vld [vmem:[#allocation2 + $0x1a0] ss:$8 sps:$4 sm:$0xff]   ;;  %v1694_v62 = vld [vmem:[#allocation2 + $0xb4] ss:$8 sps:$4 sm:$0xff]  }
  0x2f   :  { %82 = vst.msk [vmem:[%s3026_s2 + $0x180] sm:$0xff] %vm33_vm0, %v1797_v23  ;;  %83 = vst.msk [vmem:[%s3026_s2 + $0x188] sm:$0xff] %vm33_vm0, %v1797_v23  ;;  %v1730_v63 = vld [vmem:[#allocation2 + $0x1b4] ss:$8 sps:$4 sm:$0xff]   ;;  %v1732_v1 = vld [vmem:[#allocation2 + $0x1b0] ss:$8 sps:$4 sm:$0xff]  }
  0x30   :  { %84 = vst.msk [vmem:[%s3026_s2 + $0x190] sm:$0xff] %vm33_vm0, %v1797_v23  ;;  %85 = vst.msk [vmem:[%s3026_s2 + $0x198] sm:$0xff] %vm33_vm0, %v1797_v23  ;;  %v1700_v2 = vld [vmem:[#allocation2 + $0xc4] ss:$8 sps:$4 sm:$0xff]   ;;  %v1702_v4 = vld [vmem:[#allocation2 + $0xc0] ss:$8 sps:$4 sm:$0xff]  }
  0x31   :  { %689 = vmatpush1.bf16.msra.mxu0 %v1640_v9  ;;  %1618 = vmatpush1.bf16.msra.mxu1 %v1640_v9  ;;  %86 = vst.msk [vmem:[%s3026_s2 + $0x1a0] sm:$0xff] %vm33_vm0, %v1797_v23  ;;  %87 = vst.msk [vmem:[%s3026_s2 + $0x1a8] sm:$0xff] %vm33_vm0, %v1797_v23  ;;  %v1733_v3 = vld [vmem:[#allocation2 + $0x1c4] ss:$8 sps:$4 sm:$0xff]   ;;  %v1735_v5 = vld [vmem:[#allocation2 + $0x1c0] ss:$8 sps:$4 sm:$0xff]  }
  0x32   :  { %690 = vmatprep.subr.bf16.mxu0 %v1796_v0  ;;  %1603 = vmatprep.subr.bf16.mxu1 %v1796_v0  ;;  %88 = vst.msk [vmem:[%s3026_s2 + $0x1b0] sm:$0xff] %vm33_vm0, %v1797_v23  ;;  %89 = vst.msk [vmem:[%s3026_s2 + $0x1b8] sm:$0xff] %vm33_vm0, %v1797_v23  ;;  %v1706_v6 = vld [vmem:[#allocation2 + $0xd4] ss:$8 sps:$4 sm:$0xff]   ;;  %v1708_v8 = vld [vmem:[#allocation2 + $0xd0] ss:$8 sps:$4 sm:$0xff]  }
  0x33   :  { %90 = vst.msk [vmem:[%s3026_s2 + $0x1c0] sm:$0xff] %vm33_vm0, %v1797_v23  ;;  %91 = vst.msk [vmem:[%s3026_s2 + $0x1c8] sm:$0xff] %vm33_vm0, %v1797_v23  ;;  %v1736_v7 = vld [vmem:[#allocation2 + $0x1d4] ss:$8 sps:$4 sm:$0xff]   ;;  %v1738_v9 = vld [vmem:[#allocation2 + $0x1d0] ss:$8 sps:$4 sm:$0xff]  }
  0x34   :  { %92 = vst.msk [vmem:[%s3026_s2 + $0x1d0] sm:$0xff] %vm33_vm0, %v1797_v23  ;;  %93 = vst.msk [vmem:[%s3026_s2 + $0x1d8] sm:$0xff] %vm33_vm0, %v1797_v23  ;;  %v1712_v10 = vld [vmem:[#allocation2 + $0xe4] ss:$8 sps:$4 sm:$0xff]  }
  0x35   :  { %691 = vmatpush1.bf16.msra.mxu0 %v1641_v11  ;;  %1619 = vmatpush1.bf16.msra.mxu1 %v1641_v11  ;;  %94 = vst.msk [vmem:[%s3026_s2 + $0x1e0] sm:$0xff] %vm33_vm0, %v1797_v23  ;;  %95 = vst.msk [vmem:[%s3026_s2 + $0x1e8] sm:$0xff] %vm33_vm0, %v1797_v23  ;;  %v1739_v11 = vld [vmem:[#allocation2 + $0x1e4] ss:$8 sps:$4 sm:$0xff]  }
  0x36   :  { %692 = vmatprep.subr.bf16.mxu0 %v1796_v0  ;;  %1604 = vmatprep.subr.bf16.mxu1 %v1796_v0  ;;  %96 = vst.msk [vmem:[%s3026_s2 + $0x1f0] sm:$0xff] %vm33_vm0, %v1797_v23  ;;  %97 = vst.msk [vmem:[%s3026_s2 + $0x1f8] sm:$0xff] %vm33_vm0, %v1797_v23  ;;  %v131_v23 = vld [vmem:[%s3026_s2 + $0x108] sm:$0xff] }
  0x39   :  { %693 = vmatpush1.bf16.msra.mxu0 %v1642_v12  ;;  %1620 = vmatpush1.bf16.msra.mxu1 %v1642_v12  ;;  %v1714_v12 = vld [vmem:[#allocation2 + $0xe0] ss:$8 sps:$4 sm:$0xff]  }
  0x3a   :  { %694 = vmatprep.subr.bf16.mxu0 %v1796_v0  ;;  %1605 = vmatprep.subr.bf16.mxu1 %v1796_v0 }
  0x3d   :  { %695 = vmatpush1.bf16.msra.mxu0 %v1643_v13  ;;  %1621 = vmatpush1.bf16.msra.mxu1 %v1643_v13  ;;  %v1741_v13 = vld [vmem:[#allocation2 + $0x1e0] ss:$8 sps:$4 sm:$0xff]  }
  0x3e   :  { %696 = vmatprep.subr.bf16.mxu0 %v1796_v0  ;;  %1606 = vmatprep.subr.bf16.mxu1 %v1796_v0 }
  0x41   :  { %697 = vmatpush1.bf16.msra.mxu0 %v1644_v14  ;;  %1622 = vmatpush1.bf16.msra.mxu1 %v1644_v14  ;;  %v1718_v14 = vld [vmem:[#allocation2 + $0xf4] ss:$8 sps:$4 sm:$0xff]  }
  0x42   :  { %698 = vmatprep.subr.bf16.mxu0 %v1796_v0  ;;  %1607 = vmatprep.subr.bf16.mxu1 %v1796_v0 }
  0x45   :  { %699 = vmatpush1.bf16.msra.mxu0 %v1645_v15  ;;  %1623 = vmatpush1.bf16.msra.mxu1 %v1645_v15  ;;  %v1742_v15 = vld [vmem:[#allocation2 + $0x1f4] ss:$8 sps:$4 sm:$0xff]  }
  0x46   :  { %700 = vmatprep.subr.bf16.mxu0 %v1796_v0  ;;  %1608 = vmatprep.subr.bf16.mxu1 %v1796_v0 }
  0x49   :  { %701 = vmatpush1.bf16.msra.mxu0 %v1646_v16  ;;  %1624 = vmatpush1.bf16.msra.mxu1 %v1646_v16  ;;  %v1720_v16 = vld [vmem:[#allocation2 + $0xf0] ss:$8 sps:$4 sm:$0xff]  }
  0x4a   :  { %702 = vmatprep.subr.bf16.mxu0 %v1796_v0  ;;  %1609 = vmatprep.subr.bf16.mxu1 %v1796_v0 }
  0x4d   :  { %703 = vmatpush1.bf16.msra.mxu0 %v1647_v17  ;;  %1625 = vmatpush1.bf16.msra.mxu1 %v1647_v17  ;;  %v1744_v17 = vld [vmem:[#allocation2 + $0x1f0] ss:$8 sps:$4 sm:$0xff]  }
  0x4e   :  { %704 = vmatprep.subr.bf16.mxu0 %v1796_v0  ;;  %1610 = vmatprep.subr.bf16.mxu1 %v1796_v0  ;;  %v1696_v0 = vld [vmem:[#allocation2 + $0xb0] ss:$8 sps:$4 sm:$0xff]  }
  0x51   :  { %705 = vmatpush1.bf16.msra.mxu0 %v1648_v18  ;;  %1626 = vmatpush1.bf16.msra.mxu1 %v1648_v18  ;;  %v98_v18 = vld [vmem:[%s3026_s2] sm:$0xff] }
  0x54   :  { %707 = vmatmul.mubr.bf16.vlgmr.msra.gmra.mrb[0].mxu0 %v1911_v19  ;;  %835 = vmatmul.mubr.bf16.vlgmr.msra.gmra.mrb[0].mxu1 %v1913_v20  ;;  %v130_v19 = vld [vmem:[%s3026_s2 + $0x100] sm:$0xff] }
  0x55   :  { %714 = vmatprep.mubr.bf16.mxu0 %v1915_v21  ;;  %842 = vmatprep.mubr.bf16.mxu1 %v1917_v22  ;;  %v99_v21 = vld [vmem:[%s3026_s2 + $0x8] sm:$0xff] }
  0x5c   :  { %715 = vmatmul.mubr.bf16.gmra.mrb[4].mxu0 %v1654_v24  ;;  %843 = vmatmul.mubr.bf16.gmra.mrb[4].mxu1 %v1681_v25 }
  0x5d   :  { %722 = vmatprep.mubr.bf16.mxu0 %v1655_v26  ;;  %850 = vmatprep.mubr.bf16.mxu1 %v1685_v27 }
  0x64   :  { %723 = vmatmul.mubr.bf16.gmra.mrb[8].mxu0 %v1657_v28  ;;  %851 = vmatmul.mubr.bf16.gmra.mrb[8].mxu1 %v1687_v29 }
  0x65   :  { %730 = vmatprep.mubr.bf16.mxu0 %v1658_v30  ;;  %858 = vmatprep.mubr.bf16.mxu1 %v1691_v31 }
  0x6c   :  { %731 = vmatmul.mubr.bf16.gmra.mrb[12].mxu0 %v1660_v32  ;;  %859 = vmatmul.mubr.bf16.gmra.mrb[12].mxu1 %v1693_v33 }
  0x6d   :  { %738 = vmatprep.mubr.bf16.mxu0 %v1661_v34  ;;  %866 = vmatprep.mubr.bf16.mxu1 %v1697_v35  ;;  %v100_v34 = vld [vmem:[%s3026_s2 + $0x10] sm:$0xff] }
  0x6e   :  { %v132_v35 = vld [vmem:[%s3026_s2 + $0x110] sm:$0xff] }
  0x74   :  { %739 = vmatmul.mubr.bf16.gmra.mrb[16].mxu0 %v1663_v36  ;;  %867 = vmatmul.mubr.bf16.gmra.mrb[16].mxu1 %v1699_v37  ;;  %v101_v37 = vld [vmem:[%s3026_s2 + $0x18] sm:$0xff] }
  0x75   :  { %746 = vmatprep.mubr.bf16.mxu0 %v1664_v38  ;;  %874 = vmatprep.mubr.bf16.mxu1 %v1703_v39 }
  0x7c   :  { %747 = vmatmul.mubr.bf16.gmra.mrb[20].mxu0 %v1666_v40  ;;  %875 = vmatmul.mubr.bf16.gmra.mrb[20].mxu1 %v1705_v41 }
  0x7d   :  { %754 = vmatprep.mubr.bf16.mxu0 %v1667_v42  ;;  %882 = vmatprep.mubr.bf16.mxu1 %v1709_v43  ;;  %v133_v43 = vld [vmem:[%s3026_s2 + $0x118] sm:$0xff] }
  0x84   :  { %755 = vmatmul.mubr.bf16.gmra.mrb[24].mxu0 %v1669_v44  ;;  %883 = vmatmul.mubr.bf16.gmra.mrb[24].mxu1 %v1711_v45 }
  0x85   :  { %762 = vmatprep.mubr.bf16.mxu0 %v1670_v46  ;;  %890 = vmatprep.mubr.bf16.mxu1 %v1715_v47 }
  0x8c   :  { %763 = vmatmul.mubr.bf16.gmra.mrb[28].mxu0 %v1672_v48  ;;  %891 = vmatmul.mubr.bf16.gmra.mrb[28].mxu1 %v1717_v49 }
  0x8d   :  { %770 = vmatprep.mubr.bf16.mxu0 %v1676_v50  ;;  %898 = vmatprep.mubr.bf16.mxu1 %v1721_v51  ;;  %v102_v50 = vld [vmem:[%s3026_s2 + $0x20] sm:$0xff] }
  0x8e   :  { %v134_v51 = vld [vmem:[%s3026_s2 + $0x120] sm:$0xff] }
  0x94   :  { %771 = vmatmul.mubr.bf16.gmra.mrb[32].mxu0 %v1678_v52  ;;  %899 = vmatmul.mubr.bf16.gmra.mrb[32].mxu1 %v1723_v53  ;;  %v103_v53 = vld [vmem:[%s3026_s2 + $0x28] sm:$0xff] }
  0x95   :  { %778 = vmatprep.mubr.bf16.mxu0 %v1682_v54  ;;  %906 = vmatprep.mubr.bf16.mxu1 %v1724_v55 }
  0x9c   :  { %779 = vmatmul.mubr.bf16.gmra.mrb[36].mxu0 %v1684_v56  ;;  %907 = vmatmul.mubr.bf16.gmra.mrb[36].mxu1 %v1726_v57 }
  0x9d   :  { %786 = vmatprep.mubr.bf16.mxu0 %v1688_v58  ;;  %914 = vmatprep.mubr.bf16.mxu1 %v1727_v59  ;;  %v135_v59 = vld [vmem:[%s3026_s2 + $0x128] sm:$0xff] }
  0xa4   :  { %787 = vmatmul.mubr.bf16.gmra.mrb[40].mxu0 %v1690_v60  ;;  %915 = vmatmul.mubr.bf16.gmra.mrb[40].mxu1 %v1729_v61 }
  0xa5   :  { %794 = vmatprep.mubr.bf16.mxu0 %v1694_v62  ;;  %922 = vmatprep.mubr.bf16.mxu1 %v1730_v63 }
  0xac   :  { %795 = vmatmul.mubr.bf16.gmra.mrb[44].mxu0 %v1696_v0  ;;  %923 = vmatmul.mubr.bf16.gmra.mrb[44].mxu1 %v1732_v1 }
  0xad   :  { %802 = vmatprep.mubr.bf16.mxu0 %v1700_v2  ;;  %930 = vmatprep.mubr.bf16.mxu1 %v1733_v3  ;;  %v104_v2 = vld [vmem:[%s3026_s2 + $0x30] sm:$0xff] }
  0xae   :  { %v136_v3 = vld [vmem:[%s3026_s2 + $0x130] sm:$0xff] }
  0xb4   :  { %803 = vmatmul.mubr.bf16.gmra.mrb[48].mxu0 %v1702_v4  ;;  %931 = vmatmul.mubr.bf16.gmra.mrb[48].mxu1 %v1735_v5  ;;  %v105_v5 = vld [vmem:[%s3026_s2 + $0x38] sm:$0xff] }
  0xb5   :  { %810 = vmatprep.mubr.bf16.mxu0 %v1706_v6  ;;  %938 = vmatprep.mubr.bf16.mxu1 %v1736_v7 }
  0xbc   :  { %811 = vmatmul.mubr.bf16.gmra.mrb[52].mxu0 %v1708_v8  ;;  %939 = vmatmul.mubr.bf16.gmra.mrb[52].mxu1 %v1738_v9 }
  0xbd   :  { %818 = vmatprep.mubr.bf16.mxu0 %v1712_v10  ;;  %946 = vmatprep.mubr.bf16.mxu1 %v1739_v11  ;;  %v137_v11 = vld [vmem:[%s3026_s2 + $0x138] sm:$0xff] }
  0xc4   :  { %819 = vmatmul.mubr.bf16.gmra.mrb[56].mxu0 %v1714_v12  ;;  %947 = vmatmul.mubr.bf16.gmra.mrb[56].mxu1 %v1741_v13 }
  0xc5   :  { %826 = vmatprep.mubr.bf16.mxu0 %v1718_v14  ;;  %954 = vmatprep.mubr.bf16.mxu1 %v1742_v15 }
  0xcc   :  { %827 = vmatmul.mubr.bf16.gmra.mrb[60].mxu0 %v1720_v16  ;;  %955 = vmatmul.mubr.bf16.gmra.mrb[60].mxu1 %v1744_v17 }
 0x127   :  { %v708_v20 = vpop.f32.mrb[0].mxu0  ;;  %v836_v22 = vpop.f32.mrb[0].mxu1 }
 0x128   :  { %v963_v24 = vadd.f32 %v708_v20, %v98_v18  ;;  %v710_v25 = vpop.f32.mrb[1].mxu0  ;;  %v995_v26 = vadd.f32 %v836_v22, %v130_v19  ;;  %v838_v27 = vpop.f32.mrb[1].mxu1  ;;  %v106_v18 = vld [vmem:[%s3026_s2 + $0x40] sm:$0xff] }
 0x129   :  { %v711_v28 = vpop.f32.mrb[2].mxu0  ;;  %v839_v29 = vpop.f32.mrb[2].mxu1  ;;  %v138_v19 = vld [vmem:[%s3026_s2 + $0x140] sm:$0xff]  ;;  %v139_v27 = vld [vmem:[%s3026_s2 + $0x148] sm:$0xff] }
 0x12a   :  { %1028 = vst.msk [vmem:[%s3026_s2] sm:$0xff] %vm33_vm0, %v963_v24  ;;  %v964_v30 = vadd.f32 %v711_v28, %v99_v21  ;;  %v713_v31 = vpop.f32.mrb[3].mxu0  ;;  %1060 = vst.msk [vmem:[%s3026_s2 + $0x100] sm:$0xff] %vm33_vm0, %v995_v26  ;;  %v996_v32 = vadd.f32 %v839_v29, %v131_v23  ;;  %v841_v33 = vpop.f32.mrb[3].mxu1  ;;  %v107_v21 = vld [vmem:[%s3026_s2 + $0x48] sm:$0xff] }
 0x12c   :  { %1029 = vst.msk [vmem:[%s3026_s2 + $0x8] sm:$0xff] %vm33_vm0, %v964_v30  ;;  %1061 = vst.msk [vmem:[%s3026_s2 + $0x108] sm:$0xff] %vm33_vm0, %v996_v32 }
 0x12f   :  { %v716_v36 = vpop.f32.mrb[4].mxu0  ;;  %v844_v38 = vpop.f32.mrb[4].mxu1 }
 0x130   :  { %v965_v39 = vadd.f32 %v716_v36, %v100_v34  ;;  %v718_v40 = vpop.f32.mrb[5].mxu0  ;;  %v997_v41 = vadd.f32 %v844_v38, %v132_v35  ;;  %v846_v42 = vpop.f32.mrb[5].mxu1  ;;  %v108_v35 = vld [vmem:[%s3026_s2 + $0x50] sm:$0xff] }
 0x131   :  { %v719_v44 = vpop.f32.mrb[6].mxu0  ;;  %v847_v45 = vpop.f32.mrb[6].mxu1  ;;  %v140_v36 = vld [vmem:[%s3026_s2 + $0x150] sm:$0xff]  ;;  %v109_v40 = vld [vmem:[%s3026_s2 + $0x58] sm:$0xff] }
 0x132   :  { %1030 = vst.msk [vmem:[%s3026_s2 + $0x10] sm:$0xff] %vm33_vm0, %v965_v39  ;;  %v966_v46 = vadd.f32 %v719_v44, %v101_v37  ;;  %v721_v47 = vpop.f32.mrb[7].mxu0  ;;  %1062 = vst.msk [vmem:[%s3026_s2 + $0x110] sm:$0xff] %vm33_vm0, %v997_v41  ;;  %v849_v48 = vpop.f32.mrb[7].mxu1  ;;  %v998_v49 = vadd.f32 %v847_v45, %v133_v43  ;;  %v1095_v37 = vld [vmem:[%s3026_s2] sm:$0xff] }
 0x133   :  { %v1096_v34 = vld [vmem:[%s3026_s2 + $0x8] sm:$0xff]  ;;  %v141_v47 = vld [vmem:[%s3026_s2 + $0x158] sm:$0xff] }
 0x134   :  { %1031 = vst.msk [vmem:[%s3026_s2 + $0x18] sm:$0xff] %vm33_vm0, %v966_v46  ;;  %1063 = vst.msk [vmem:[%s3026_s2 + $0x118] sm:$0xff] %vm33_vm0, %v998_v49  ;;  %v1293_v42 = vmul.f32 %v1096_v34, %v1096_v34 }
 0x137   :  { %v724_v52 = vpop.f32.mrb[8].mxu0  ;;  %v852_v54 = vpop.f32.mrb[8].mxu1 }
 0x138   :  { %v967_v55 = vadd.f32 %v724_v52, %v102_v50  ;;  %v726_v56 = vpop.f32.mrb[9].mxu0  ;;  %v999_v57 = vadd.f32 %v852_v54, %v134_v51  ;;  %v854_v58 = vpop.f32.mrb[9].mxu1  ;;  %v1292_v50 = vmul.f32 %v1095_v37, %v1095_v37  ;;  %v1160_v51 = vsel %vm33_vm0, %v1096_v34, 0.0 }
 0x139   :  { %v727_v60 = vpop.f32.mrb[10].mxu0  ;;  %v855_v61 = vpop.f32.mrb[10].mxu1  ;;  %v1097_v38 = vld [vmem:[%s3026_s2 + $0x10] sm:$0xff]  ;;  %v1159_v58 = vsel %vm33_vm0, %v1095_v37, 0.0 }
 0x13a   :  { %1032 = vst.msk [vmem:[%s3026_s2 + $0x20] sm:$0xff] %vm33_vm0, %v967_v55  ;;  %v968_v62 = vadd.f32 %v727_v60, %v103_v53  ;;  %v729_v63 = vpop.f32.mrb[11].mxu0  ;;  %1064 = vst.msk [vmem:[%s3026_s2 + $0x120] sm:$0xff] %vm33_vm0, %v999_v57  ;;  %v857_v0 = vpop.f32.mrb[11].mxu1  ;;  %v1000_v1 = vadd.f32 %v855_v61, %v135_v59  ;;  %v1294_v52 = vmul.f32 %v1097_v38, %v1097_v38  ;;  %v1357_v59 = vsel %vm33_vm0, %v1293_v42, 0.0 }
 0x13b   :  { %v1098_v56 = vld [vmem:[%s3026_s2 + $0x18] sm:$0xff]  ;;  %v1162_v60 = vsel %vm33_vm0, %v1097_v38, 0.0  ;;  %v1161_v61 = vadd.f32 %v1160_v51, %v1159_v58  ;;  %v110_v63 = vld [vmem:[%s3026_s2 + $0x60] sm:$0xff] }
 0x13c   :  { %1033 = vst.msk [vmem:[%s3026_s2 + $0x28] sm:$0xff] %vm33_vm0, %v968_v62  ;;  %1065 = vst.msk [vmem:[%s3026_s2 + $0x128] sm:$0xff] %vm33_vm0, %v1000_v1  ;;  %v142_v0 = vld [vmem:[%s3026_s2 + $0x160] sm:$0xff]  ;;  %v1356_v1 = vsel %vm33_vm0, %v1292_v50, 0.0 }
 0x13f   :  { %v732_v4 = vpop.f32.mrb[12].mxu0  ;;  %v860_v6 = vpop.f32.mrb[12].mxu1 }
 0x140   :  { %v969_v7 = vadd.f32 %v732_v4, %v104_v2  ;;  %v734_v8 = vpop.f32.mrb[13].mxu0  ;;  %v1001_v9 = vadd.f32 %v860_v6, %v136_v3  ;;  %v862_v10 = vpop.f32.mrb[13].mxu1  ;;  %v1359_v2 = vsel %vm33_vm0, %v1294_v52, 0.0  ;;  %v1295_v3 = vmul.f32 %v1098_v56, %v1098_v56 }
 0x141   :  { %v735_v12 = vpop.f32.mrb[14].mxu0  ;;  %v863_v13 = vpop.f32.mrb[14].mxu1  ;;  %v1099_v62 = vld [vmem:[%s3026_s2 + $0x20] sm:$0xff]  ;;  %v1358_v4 = vadd.f32 %v1357_v59, %v1356_v1 }
 0x142   :  { %1034 = vst.msk [vmem:[%s3026_s2 + $0x30] sm:$0xff] %vm33_vm0, %v969_v7  ;;  %v970_v14 = vadd.f32 %v735_v12, %v105_v5  ;;  %v737_v15 = vpop.f32.mrb[15].mxu0  ;;  %1066 = vst.msk [vmem:[%s3026_s2 + $0x130] sm:$0xff] %vm33_vm0, %v1001_v9  ;;  %v865_v16 = vpop.f32.mrb[15].mxu1  ;;  %v1002_v17 = vadd.f32 %v863_v13, %v137_v11  ;;  %v1163_v5 = vadd.f32 %v1162_v60, %v1161_v61  ;;  %v111_v7 = vld [vmem:[%s3026_s2 + $0x68] sm:$0xff]  ;;  %v1164_v9 = vsel %vm33_vm0, %v1098_v56, 0.0 }
 0x143   :  { %v1296_v10 = vmul.f32 %v1099_v62, %v1099_v62  ;;  %v143_v15 = vld [vmem:[%s3026_s2 + $0x168] sm:$0xff]  ;;  %v1360_v16 = vadd.f32 %v1359_v2, %v1358_v4  ;;  %v146_v1 = vld [vmem:[%s3026_s2 + $0x180] sm:$0xff] }
 0x144   :  { %1035 = vst.msk [vmem:[%s3026_s2 + $0x38] sm:$0xff] %vm33_vm0, %v970_v14  ;;  %1067 = vst.msk [vmem:[%s3026_s2 + $0x138] sm:$0xff] %vm33_vm0, %v1002_v17  ;;  %v1100_v17 = vld [vmem:[%s3026_s2 + $0x28] sm:$0xff] }
 0x145   :  { %v1168_v34 = vsel %vm33_vm0, %v1100_v17, 0.0 }
 0x147   :  { %v740_v20 = vpop.f32.mrb[16].mxu0  ;;  %v868_v22 = vpop.f32.mrb[16].mxu1 }
 0x148   :  { %v971_v23 = vadd.f32 %v740_v20, %v106_v18  ;;  %v742_v24 = vpop.f32.mrb[17].mxu0  ;;  %v1003_v25 = vadd.f32 %v868_v22, %v138_v19  ;;  %v870_v26 = vpop.f32.mrb[17].mxu1  ;;  %v1361_v20 = vsel %vm33_vm0, %v1295_v3, 0.0 }
 0x149   :  { %v743_v28 = vpop.f32.mrb[18].mxu0  ;;  %v871_v29 = vpop.f32.mrb[18].mxu1  ;;  %v1101_v26 = vld [vmem:[%s3026_s2 + $0x30] sm:$0xff] }
 0x14a   :  { %1036 = vst.msk [vmem:[%s3026_s2 + $0x40] sm:$0xff] %vm33_vm0, %v971_v23  ;;  %v972_v30 = vadd.f32 %v743_v28, %v107_v21  ;;  %v745_v31 = vpop.f32.mrb[19].mxu0  ;;  %1068 = vst.msk [vmem:[%s3026_s2 + $0x140] sm:$0xff] %vm33_vm0, %v1003_v25  ;;  %v873_v32 = vpop.f32.mrb[19].mxu1  ;;  %v1004_v33 = vadd.f32 %v871_v29, %v139_v27  ;;  %v1166_v21 = vsel %vm33_vm0, %v1099_v62, 0.0  ;;  %v1165_v25 = vadd.f32 %v1164_v9, %v1163_v5 }
 0x14b   :  { %v1363_v28 = vsel %vm33_vm0, %v1296_v10, 0.0  ;;  %v1297_v29 = vmul.f32 %v1100_v17, %v1100_v17  ;;  %v112_v32 = vld [vmem:[%s3026_s2 + $0x70] sm:$0xff]  ;;  %v1102_v37 = vld [vmem:[%s3026_s2 + $0x38] sm:$0xff]  ;;  %v1170_v42 = vsel %vm33_vm0, %v1101_v26, 0.0 }
 0x14c   :  { %1037 = vst.msk [vmem:[%s3026_s2 + $0x48] sm:$0xff] %vm33_vm0, %v972_v30  ;;  %1069 = vst.msk [vmem:[%s3026_s2 + $0x148] sm:$0xff] %vm33_vm0, %v1004_v33  ;;  %v1362_v30 = vadd.f32 %v1361_v20, %v1360_v16  ;;  %v1167_v31 = vadd.f32 %v1166_v21, %v1165_v25  ;;  %v144_v33 = vld [vmem:[%s3026_s2 + $0x170] sm:$0xff]  ;;  %v1172_v60 = vsel %vm33_vm0, %v1102_v37, 0.0 }
 0x14f   :  { %v748_v39 = vpop.f32.mrb[20].mxu0  ;;  %v876_v41 = vpop.f32.mrb[20].mxu1 }
 0x150   :  { %v973_v43 = vadd.f32 %v748_v39, %v108_v35  ;;  %v750_v44 = vpop.f32.mrb[21].mxu0  ;;  %v1005_v45 = vadd.f32 %v876_v41, %v140_v36  ;;  %v878_v46 = vpop.f32.mrb[21].mxu1  ;;  %v1298_v35 = vmul.f32 %v1101_v26, %v1101_v26  ;;  %v1364_v36 = vadd.f32 %v1363_v28, %v1362_v30  ;;  %v113_v39 = vld [vmem:[%s3026_s2 + $0x78] sm:$0xff] }
 0x151   :  { %v751_v48 = vpop.f32.mrb[22].mxu0  ;;  %v879_v49 = vpop.f32.mrb[22].mxu1  ;;  %v1365_v41 = vsel %vm33_vm0, %v1297_v29, 0.0 }
 0x152   :  { %1038 = vst.msk [vmem:[%s3026_s2 + $0x50] sm:$0xff] %vm33_vm0, %v973_v43  ;;  %v974_v53 = vadd.f32 %v751_v48, %v109_v40  ;;  %v753_v54 = vpop.f32.mrb[23].mxu0  ;;  %1070 = vst.msk [vmem:[%s3026_s2 + $0x150] sm:$0xff] %vm33_vm0, %v1005_v45  ;;  %v881_v55 = vpop.f32.mrb[23].mxu1  ;;  %v1006_v57 = vadd.f32 %v879_v49, %v141_v47  ;;  %v145_v47 = vld [vmem:[%s3026_s2 + $0x178] sm:$0xff]  ;;  %v1169_v48 = vadd.f32 %v1168_v34, %v1167_v31  ;;  %v1103_v49 = vld [vmem:[%s3026_s2 + $0x40] sm:$0xff] }
 0x153   :  { %v1367_v52 = vsel %vm33_vm0, %v1298_v35, 0.0  ;;  %v1300_v61 = vmul.f32 %v1103_v49, %v1103_v49  ;;  %v1174_v3 = vsel %vm33_vm0, %v1103_v49, 0.0 }
 0x154   :  { %1039 = vst.msk [vmem:[%s3026_s2 + $0x58] sm:$0xff] %vm33_vm0, %v974_v53  ;;  %1071 = vst.msk [vmem:[%s3026_s2 + $0x158] sm:$0xff] %vm33_vm0, %v1006_v57  ;;  %v1299_v53 = vmul.f32 %v1102_v37, %v1102_v37  ;;  %v1366_v57 = vadd.f32 %v1365_v41, %v1364_v36  ;;  %v1171_v58 = vadd.f32 %v1170_v42, %v1169_v48 }
 0x155   :  { %v1371_v9 = vsel %vm33_vm0, %v1300_v61, 0.0 }
 0x156   :  { %v1368_v62 = vadd.f32 %v1367_v52, %v1366_v57  ;;  %v1369_v2 = vsel %vm33_vm0, %v1299_v53, 0.0  ;;  %v1173_v4 = vadd.f32 %v1172_v60, %v1171_v58 }
 0x157   :  { %v756_v6 = vpop.f32.mrb[24].mxu0  ;;  %v884_v8 = vpop.f32.mrb[24].mxu1 }
 0x158   :  { %v975_v11 = vadd.f32 %v756_v6, %v110_v63  ;;  %v758_v12 = vpop.f32.mrb[25].mxu0  ;;  %v1007_v13 = vadd.f32 %v884_v8, %v142_v0  ;;  %v886_v14 = vpop.f32.mrb[25].mxu1  ;;  %v1104_v63 = vld [vmem:[%s3026_s2 + $0x48] sm:$0xff]  ;;  %v114_v0 = vld [vmem:[%s3026_s2 + $0x80] sm:$0xff]  ;;  %v1370_v16 = vadd.f32 %v1369_v2, %v1368_v62  ;;  %v1175_v17 = vadd.f32 %v1174_v3, %v1173_v4 }
 0x159   :  { %v759_v18 = vpop.f32.mrb[26].mxu0  ;;  %v887_v19 = vpop.f32.mrb[26].mxu1  ;;  %v1105_v5 = vld [vmem:[%s3026_s2 + $0x50] sm:$0xff]  ;;  %v1301_v10 = vmul.f32 %v1104_v63, %v1104_v63  ;;  %v1176_v20 = vsel %vm33_vm0, %v1104_v63, 0.0 }
 0x15a   :  { %1040 = vst.msk [vmem:[%s3026_s2 + $0x60] sm:$0xff] %vm33_vm0, %v975_v11  ;;  %v976_v22 = vadd.f32 %v759_v18, %v111_v7  ;;  %v761_v23 = vpop.f32.mrb[27].mxu0  ;;  %1072 = vst.msk [vmem:[%s3026_s2 + $0x160] sm:$0xff] %vm33_vm0, %v1007_v13  ;;  %v889_v24 = vpop.f32.mrb[27].mxu1  ;;  %v1008_v27 = vadd.f32 %v887_v19, %v143_v15  ;;  %v115_v7 = vld [vmem:[%s3026_s2 + $0x88] sm:$0xff]  ;;  %v1302_v21 = vmul.f32 %v1105_v5, %v1105_v5  ;;  %v1178_v29 = vsel %vm33_vm0, %v1105_v5, 0.0 }
 0x15b   :  { %v147_v15 = vld [vmem:[%s3026_s2 + $0x188] sm:$0xff]  ;;  %v1372_v25 = vadd.f32 %v1371_v9, %v1370_v16  ;;  %v1106_v26 = vld [vmem:[%s3026_s2 + $0x58] sm:$0xff]  ;;  %v1373_v28 = vsel %vm33_vm0, %v1301_v10, 0.0  ;;  %v1177_v30 = vadd.f32 %v1176_v20, %v1175_v17 }
 0x15c   :  { %1041 = vst.msk [vmem:[%s3026_s2 + $0x68] sm:$0xff] %vm33_vm0, %v976_v22  ;;  %1073 = vst.msk [vmem:[%s3026_s2 + $0x168] sm:$0xff] %vm33_vm0, %v1008_v27  ;;  %v1375_v34 = vsel %vm33_vm0, %v1302_v21, 0.0  ;;  %v1303_v35 = vmul.f32 %v1106_v26, %v1106_v26  ;;  %v1180_v41 = vsel %vm33_vm0, %v1106_v26, 0.0 }
 0x15d   :  { %v1374_v36 = vadd.f32 %v1373_v28, %v1372_v25  ;;  %v1179_v37 = vadd.f32 %v1178_v29, %v1177_v30 }
 0x15e   :  { %v1377_v52 = vsel %vm33_vm0, %v1303_v35, 0.0 }
 0x15f   :  { %v764_v38 = vpop.f32.mrb[28].mxu0  ;;  %v892_v40 = vpop.f32.mrb[28].mxu1  ;;  %v1376_v48 = vadd.f32 %v1375_v34, %v1374_v36  ;;  %v1181_v57 = vadd.f32 %v1180_v41, %v1179_v37  ;;  %v153_v41 = vld [vmem:[%s3026_s2 + $0x1b8] sm:$0xff] }
 0x160   :  { %v977_v43 = vadd.f32 %v764_v38, %v112_v32  ;;  %v766_v44 = vpop.f32.mrb[29].mxu0  ;;  %v1009_v45 = vadd.f32 %v892_v40, %v144_v33  ;;  %v894_v46 = vpop.f32.mrb[29].mxu1  ;;  %v116_v32 = vld [vmem:[%s3026_s2 + $0x90] sm:$0xff] }
 0x161   :  { %v767_v50 = vpop.f32.mrb[30].mxu0  ;;  %v895_v51 = vpop.f32.mrb[30].mxu1  ;;  %v1107_v31 = vld [vmem:[%s3026_s2 + $0x60] sm:$0xff]  ;;  %v148_v33 = vld [vmem:[%s3026_s2 + $0x190] sm:$0xff]  ;;  %v1378_v62 = vadd.f32 %v1377_v52, %v1376_v48 }
 0x162   :  { %1042 = vst.msk [vmem:[%s3026_s2 + $0x70] sm:$0xff] %vm33_vm0, %v977_v43  ;;  %v978_v54 = vadd.f32 %v767_v50, %v113_v39  ;;  %v769_v55 = vpop.f32.mrb[31].mxu0  ;;  %1074 = vst.msk [vmem:[%s3026_s2 + $0x170] sm:$0xff] %vm33_vm0, %v1009_v45  ;;  %v897_v56 = vpop.f32.mrb[31].mxu1  ;;  %v1010_v59 = vadd.f32 %v895_v51, %v145_v47  ;;  %v117_v39 = vld [vmem:[%s3026_s2 + $0x98] sm:$0xff]  ;;  %v1304_v42 = vmul.f32 %v1107_v31, %v1107_v31  ;;  %v1182_v53 = vsel %vm33_vm0, %v1107_v31, 0.0 }
 0x163   :  { %v149_v47 = vld [vmem:[%s3026_s2 + $0x198] sm:$0xff]  ;;  %v1108_v49 = vld [vmem:[%s3026_s2 + $0x68] sm:$0xff]  ;;  %v1183_v63 = vadd.f32 %v1182_v53, %v1181_v57 }
 0x164   :  { %1043 = vst.msk [vmem:[%s3026_s2 + $0x78] sm:$0xff] %vm33_vm0, %v978_v54  ;;  %1075 = vst.msk [vmem:[%s3026_s2 + $0x178] sm:$0xff] %vm33_vm0, %v1010_v59  ;;  %v1379_v60 = vsel %vm33_vm0, %v1304_v42, 0.0  ;;  %v1305_v61 = vmul.f32 %v1108_v49, %v1108_v49  ;;  %v1184_v2 = vsel %vm33_vm0, %v1108_v49, 0.0 }
 0x165   :  { %v1380_v4 = vadd.f32 %v1379_v60, %v1378_v62  ;;  %v1185_v16 = vadd.f32 %v1184_v2, %v1183_v63 }
 0x166   :  { %v1381_v9 = vsel %vm33_vm0, %v1305_v61, 0.0 }
 0x167   :  { %v772_v6 = vpop.f32.mrb[32].mxu0  ;;  %v900_v8 = vpop.f32.mrb[32].mxu1  ;;  %v1382_v25 = vadd.f32 %v1381_v9, %v1380_v4  ;;  %v155_v9 = vld [vmem:[%s3026_s2 + $0x1c8] sm:$0xff] }
 0x168   :  { %v979_v11 = vadd.f32 %v772_v6, %v114_v0  ;;  %v774_v12 = vpop.f32.mrb[33].mxu0  ;;  %v1011_v13 = vadd.f32 %v900_v8, %v146_v1  ;;  %v902_v14 = vpop.f32.mrb[33].mxu1  ;;  %v118_v0 = vld [vmem:[%s3026_s2 + $0xa0] sm:$0xff] }
 0x169   :  { %v775_v18 = vpop.f32.mrb[34].mxu0  ;;  %v903_v19 = vpop.f32.mrb[34].mxu1  ;;  %v1109_v58 = vld [vmem:[%s3026_s2 + $0x70] sm:$0xff]  ;;  %v150_v1 = vld [vmem:[%s3026_s2 + $0x1a0] sm:$0xff] }
 0x16a   :  { %1044 = vst.msk [vmem:[%s3026_s2 + $0x80] sm:$0xff] %vm33_vm0, %v979_v11  ;;  %v980_v22 = vadd.f32 %v775_v18, %v115_v7  ;;  %v777_v23 = vpop.f32.mrb[35].mxu0  ;;  %1076 = vst.msk [vmem:[%s3026_s2 + $0x180] sm:$0xff] %vm33_vm0, %v1011_v13  ;;  %v905_v24 = vpop.f32.mrb[35].mxu1  ;;  %v1012_v27 = vadd.f32 %v903_v19, %v147_v15  ;;  %v1306_v3 = vmul.f32 %v1109_v58, %v1109_v58  ;;  %v119_v7 = vld [vmem:[%s3026_s2 + $0xa8] sm:$0xff]  ;;  %v1186_v10 = vsel %vm33_vm0, %v1109_v58, 0.0 }
 0x16b   :  { %v1110_v5 = vld [vmem:[%s3026_s2 + $0x78] sm:$0xff]  ;;  %v151_v15 = vld [vmem:[%s3026_s2 + $0x1a8] sm:$0xff]  ;;  %v1187_v26 = vadd.f32 %v1186_v10, %v1185_v16 }
 0x16c   :  { %1045 = vst.msk [vmem:[%s3026_s2 + $0x88] sm:$0xff] %vm33_vm0, %v980_v22  ;;  %1077 = vst.msk [vmem:[%s3026_s2 + $0x188] sm:$0xff] %vm33_vm0, %v1012_v27  ;;  %v1383_v20 = vsel %vm33_vm0, %v1306_v3, 0.0  ;;  %v1307_v21 = vmul.f32 %v1110_v5, %v1110_v5  ;;  %v1188_v28 = vsel %vm33_vm0, %v1110_v5, 0.0 }
 0x16d   :  { %v1384_v30 = vadd.f32 %v1383_v20, %v1382_v25  ;;  %v1189_v36 = vadd.f32 %v1188_v28, %v1187_v26 }
 0x16e   :  { %v1385_v34 = vsel %vm33_vm0, %v1307_v21, 0.0 }
 0x16f   :  { %v780_v38 = vpop.f32.mrb[36].mxu0  ;;  %v908_v40 = vpop.f32.mrb[36].mxu1  ;;  %v1386_v48 = vadd.f32 %v1385_v34, %v1384_v30 }
 0x170   :  { %v981_v43 = vadd.f32 %v780_v38, %v116_v32  ;;  %v782_v44 = vpop.f32.mrb[37].mxu0  ;;  %v1013_v45 = vadd.f32 %v908_v40, %v148_v33  ;;  %v910_v46 = vpop.f32.mrb[37].mxu1  ;;  %v120_v32 = vld [vmem:[%s3026_s2 + $0xb0] sm:$0xff] }
 0x171   :  { %v783_v50 = vpop.f32.mrb[38].mxu0  ;;  %v911_v51 = vpop.f32.mrb[38].mxu1  ;;  %v1111_v17 = vld [vmem:[%s3026_s2 + $0x80] sm:$0xff]  ;;  %v152_v33 = vld [vmem:[%s3026_s2 + $0x1b0] sm:$0xff] }
 0x172   :  { %1046 = vst.msk [vmem:[%s3026_s2 + $0x90] sm:$0xff] %vm33_vm0, %v981_v43  ;;  %v982_v54 = vadd.f32 %v783_v50, %v117_v39  ;;  %v785_v55 = vpop.f32.mrb[39].mxu0  ;;  %1078 = vst.msk [vmem:[%s3026_s2 + $0x190] sm:$0xff] %vm33_vm0, %v1013_v45  ;;  %v913_v56 = vpop.f32.mrb[39].mxu1  ;;  %v1014_v59 = vadd.f32 %v911_v51, %v149_v47  ;;  %v1308_v29 = vmul.f32 %v1111_v17, %v1111_v17  ;;  %v1190_v35 = vsel %vm33_vm0, %v1111_v17, 0.0  ;;  %v121_v39 = vld [vmem:[%s3026_s2 + $0xb8] sm:$0xff] }
 0x173   :  { %v1112_v31 = vld [vmem:[%s3026_s2 + $0x88] sm:$0xff]  ;;  %v1191_v49 = vadd.f32 %v1190_v35, %v1189_v36 }
 0x174   :  { %1047 = vst.msk [vmem:[%s3026_s2 + $0x98] sm:$0xff] %vm33_vm0, %v982_v54  ;;  %1079 = vst.msk [vmem:[%s3026_s2 + $0x198] sm:$0xff] %vm33_vm0, %v1014_v59  ;;  %v1387_v42 = vsel %vm33_vm0, %v1308_v29, 0.0  ;;  %v1309_v43 = vmul.f32 %v1112_v31, %v1112_v31  ;;  %v1192_v52 = vsel %vm33_vm0, %v1112_v31, 0.0 }
 0x175   :  { %v1388_v58 = vadd.f32 %v1387_v42, %v1386_v48  ;;  %v1193_v62 = vadd.f32 %v1192_v52, %v1191_v49 }
 0x176   :  { %v1389_v60 = vsel %vm33_vm0, %v1309_v43, 0.0 }
 0x177   :  { %v788_v6 = vpop.f32.mrb[40].mxu0  ;;  %v916_v8 = vpop.f32.mrb[40].mxu1  ;;  %v1390_v4 = vadd.f32 %v1389_v60, %v1388_v58 }
 0x178   :  { %v983_v11 = vadd.f32 %v788_v6, %v118_v0  ;;  %v790_v12 = vpop.f32.mrb[41].mxu0  ;;  %v1015_v13 = vadd.f32 %v916_v8, %v150_v1  ;;  %v918_v14 = vpop.f32.mrb[41].mxu1  ;;  %v122_v0 = vld [vmem:[%s3026_s2 + $0xc0] sm:$0xff] }
 0x179   :  { %v791_v18 = vpop.f32.mrb[42].mxu0  ;;  %v919_v19 = vpop.f32.mrb[42].mxu1  ;;  %v1113_v37 = vld [vmem:[%s3026_s2 + $0x90] sm:$0xff]  ;;  %v154_v1 = vld [vmem:[%s3026_s2 + $0x1c0] sm:$0xff] }
 0x17a   :  { %1048 = vst.msk [vmem:[%s3026_s2 + $0xa0] sm:$0xff] %vm33_vm0, %v983_v11  ;;  %v984_v22 = vadd.f32 %v791_v18, %v119_v7  ;;  %v793_v23 = vpop.f32.mrb[43].mxu0  ;;  %1080 = vst.msk [vmem:[%s3026_s2 + $0x1a0] sm:$0xff] %vm33_vm0, %v1015_v13  ;;  %v921_v24 = vpop.f32.mrb[43].mxu1  ;;  %v1016_v27 = vadd.f32 %v919_v19, %v151_v15  ;;  %v1310_v53 = vmul.f32 %v1113_v37, %v1113_v37  ;;  %v1194_v61 = vsel %vm33_vm0, %v1113_v37, 0.0  ;;  %v123_v7 = vld [vmem:[%s3026_s2 + $0xc8] sm:$0xff] }
 0x17b   :  { %v1114_v59 = vld [vmem:[%s3026_s2 + $0x98] sm:$0xff]  ;;  %v1195_v5 = vadd.f32 %v1194_v61, %v1193_v62 }
 0x17c   :  { %1049 = vst.msk [vmem:[%s3026_s2 + $0xa8] sm:$0xff] %vm33_vm0, %v984_v22  ;;  %1081 = vst.msk [vmem:[%s3026_s2 + $0x1a8] sm:$0xff] %vm33_vm0, %v1016_v27  ;;  %v1391_v2 = vsel %vm33_vm0, %v1310_v53, 0.0  ;;  %v1311_v3 = vmul.f32 %v1114_v59, %v1114_v59  ;;  %v1196_v10 = vsel %vm33_vm0, %v1114_v59, 0.0 }
 0x17d   :  { %v1392_v16 = vadd.f32 %v1391_v2, %v1390_v4  ;;  %v1197_v26 = vadd.f32 %v1196_v10, %v1195_v5 }
 0x17e   :  { %v1393_v20 = vsel %vm33_vm0, %v1311_v3, 0.0 }
 0x17f   :  { %v796_v38 = vpop.f32.mrb[44].mxu0  ;;  %v924_v40 = vpop.f32.mrb[44].mxu1  ;;  %v1394_v30 = vadd.f32 %v1393_v20, %v1392_v16 }
 0x180   :  { %v985_v44 = vadd.f32 %v796_v38, %v120_v32  ;;  %v798_v45 = vpop.f32.mrb[45].mxu0  ;;  %v1017_v46 = vadd.f32 %v924_v40, %v152_v33  ;;  %v926_v47 = vpop.f32.mrb[45].mxu1  ;;  %v124_v32 = vld [vmem:[%s3026_s2 + $0xd0] sm:$0xff] }
 0x181   :  { %v799_v50 = vpop.f32.mrb[46].mxu0  ;;  %v927_v51 = vpop.f32.mrb[46].mxu1  ;;  %v1115_v63 = vld [vmem:[%s3026_s2 + $0xa0] sm:$0xff]  ;;  %v156_v33 = vld [vmem:[%s3026_s2 + $0x1d0] sm:$0xff] }
 0x182   :  { %1050 = vst.msk [vmem:[%s3026_s2 + $0xb0] sm:$0xff] %vm33_vm0, %v985_v44  ;;  %v986_v54 = vadd.f32 %v799_v50, %v121_v39  ;;  %v801_v55 = vpop.f32.mrb[47].mxu0  ;;  %1082 = vst.msk [vmem:[%s3026_s2 + $0x1b0] sm:$0xff] %vm33_vm0, %v1017_v46  ;;  %v1018_v56 = vadd.f32 %v927_v51, %v153_v41  ;;  %v929_v57 = vpop.f32.mrb[47].mxu1  ;;  %v1312_v11 = vmul.f32 %v1115_v63, %v1115_v63  ;;  %v1198_v21 = vsel %vm33_vm0, %v1115_v63, 0.0  ;;  %v125_v39 = vld [vmem:[%s3026_s2 + $0xd8] sm:$0xff] }
 0x183   :  { %v1116_v17 = vld [vmem:[%s3026_s2 + $0xa8] sm:$0xff]  ;;  %v1199_v31 = vadd.f32 %v1198_v21, %v1197_v26  ;;  %v157_v41 = vld [vmem:[%s3026_s2 + $0x1d8] sm:$0xff] }
 0x184   :  { %1051 = vst.msk [vmem:[%s3026_s2 + $0xb8] sm:$0xff] %vm33_vm0, %v986_v54  ;;  %1083 = vst.msk [vmem:[%s3026_s2 + $0x1b8] sm:$0xff] %vm33_vm0, %v1018_v56  ;;  %v1395_v28 = vsel %vm33_vm0, %v1312_v11, 0.0  ;;  %v1313_v29 = vmul.f32 %v1116_v17, %v1116_v17  ;;  %v1200_v34 = vsel %vm33_vm0, %v1116_v17, 0.0 }
 0x185   :  { %v1396_v36 = vadd.f32 %v1395_v28, %v1394_v30  ;;  %v1201_v48 = vadd.f32 %v1200_v34, %v1199_v31 }
 0x186   :  { %v1397_v42 = vsel %vm33_vm0, %v1313_v29, 0.0 }
 0x187   :  { %v804_v6 = vpop.f32.mrb[48].mxu0  ;;  %v932_v8 = vpop.f32.mrb[48].mxu1  ;;  %v1398_v58 = vadd.f32 %v1397_v42, %v1396_v36 }
 0x188   :  { %v987_v12 = vadd.f32 %v804_v6, %v122_v0  ;;  %v806_v13 = vpop.f32.mrb[49].mxu0  ;;  %v1019_v14 = vadd.f32 %v932_v8, %v154_v1  ;;  %v934_v15 = vpop.f32.mrb[49].mxu1  ;;  %v126_v0 = vld [vmem:[%s3026_s2 + $0xe0] sm:$0xff]  ;;  %v127_v6 = vld [vmem:[%s3026_s2 + $0xe8] sm:$0xff] }
 0x189   :  { %v807_v18 = vpop.f32.mrb[50].mxu0  ;;  %v935_v19 = vpop.f32.mrb[50].mxu1  ;;  %v1117_v27 = vld [vmem:[%s3026_s2 + $0xb0] sm:$0xff]  ;;  %v158_v1 = vld [vmem:[%s3026_s2 + $0x1e0] sm:$0xff]  ;;  %v159_v8 = vld [vmem:[%s3026_s2 + $0x1e8] sm:$0xff] }
 0x18a   :  { %1052 = vst.msk [vmem:[%s3026_s2 + $0xc0] sm:$0xff] %vm33_vm0, %v987_v12  ;;  %v988_v22 = vadd.f32 %v807_v18, %v123_v7  ;;  %v809_v23 = vpop.f32.mrb[51].mxu0  ;;  %1084 = vst.msk [vmem:[%s3026_s2 + $0x1c0] sm:$0xff] %vm33_vm0, %v1019_v14  ;;  %v1020_v24 = vadd.f32 %v935_v19, %v155_v9  ;;  %v937_v25 = vpop.f32.mrb[51].mxu1  ;;  %v1314_v35 = vmul.f32 %v1117_v27, %v1117_v27  ;;  %v1202_v43 = vsel %vm33_vm0, %v1117_v27, 0.0 }
 0x18b   :  { %v1118_v37 = vld [vmem:[%s3026_s2 + $0xb8] sm:$0xff]  ;;  %v1203_v59 = vadd.f32 %v1202_v43, %v1201_v48 }
 0x18c   :  { %1053 = vst.msk [vmem:[%s3026_s2 + $0xc8] sm:$0xff] %vm33_vm0, %v988_v22  ;;  %1085 = vst.msk [vmem:[%s3026_s2 + $0x1c8] sm:$0xff] %vm33_vm0, %v1020_v24  ;;  %v1399_v52 = vsel %vm33_vm0, %v1314_v35, 0.0  ;;  %v1315_v53 = vmul.f32 %v1118_v37, %v1118_v37  ;;  %v1204_v60 = vsel %vm33_vm0, %v1118_v37, 0.0 }
 0x18d   :  { %v1400_v62 = vadd.f32 %v1399_v52, %v1398_v58  ;;  %v1205_v4 = vadd.f32 %v1204_v60, %v1203_v59 }
 0x18e   :  { %v1401_v2 = vsel %vm33_vm0, %v1315_v53, 0.0 }
 0x18f   :  { %v812_v38 = vpop.f32.mrb[52].mxu0  ;;  %v940_v40 = vpop.f32.mrb[52].mxu1  ;;  %v1402_v15 = vadd.f32 %v1401_v2, %v1400_v62  ;;  %v1127_v2 = vld [vmem:[%s3026_s2 + $0x100] sm:$0xff] }
 0x190   :  { %v989_v44 = vadd.f32 %v812_v38, %v124_v32  ;;  %v814_v45 = vpop.f32.mrb[53].mxu0  ;;  %v1021_v46 = vadd.f32 %v940_v40, %v156_v33  ;;  %v942_v47 = vpop.f32.mrb[53].mxu1  ;;  %v128_v32 = vld [vmem:[%s3026_s2 + $0xf0] sm:$0xff]  ;;  %v129_v38 = vld [vmem:[%s3026_s2 + $0xf8] sm:$0xff] }
 0x191   :  { %v1119_v49 = vld [vmem:[%s3026_s2 + $0xc0] sm:$0xff]  ;;  %v815_v50 = vpop.f32.mrb[54].mxu0  ;;  %v943_v51 = vpop.f32.mrb[54].mxu1  ;;  %v160_v33 = vld [vmem:[%s3026_s2 + $0x1f0] sm:$0xff]  ;;  %v161_v40 = vld [vmem:[%s3026_s2 + $0x1f8] sm:$0xff] }
 0x192   :  { %1054 = vst.msk [vmem:[%s3026_s2 + $0xd0] sm:$0xff] %vm33_vm0, %v989_v44  ;;  %v990_v54 = vadd.f32 %v815_v50, %v125_v39  ;;  %v817_v55 = vpop.f32.mrb[55].mxu0  ;;  %1086 = vst.msk [vmem:[%s3026_s2 + $0x1d0] sm:$0xff] %vm33_vm0, %v1021_v46  ;;  %v1022_v56 = vadd.f32 %v943_v51, %v157_v41  ;;  %v945_v57 = vpop.f32.mrb[55].mxu1  ;;  %v1316_v61 = vmul.f32 %v1119_v49, %v1119_v49  ;;  %v1206_v3 = vsel %vm33_vm0, %v1119_v49, 0.0 }
 0x193   :  { %v1120_v63 = vld [vmem:[%s3026_s2 + $0xc8] sm:$0xff]  ;;  %v1207_v16 = vadd.f32 %v1206_v3, %v1205_v4 }
 0x194   :  { %1055 = vst.msk [vmem:[%s3026_s2 + $0xd8] sm:$0xff] %vm33_vm0, %v990_v54  ;;  %1087 = vst.msk [vmem:[%s3026_s2 + $0x1d8] sm:$0xff] %vm33_vm0, %v1022_v56  ;;  %v1403_v9 = vsel %vm33_vm0, %v1316_v61, 0.0  ;;  %v1317_v10 = vmul.f32 %v1120_v63, %v1120_v63  ;;  %v1208_v20 = vsel %vm33_vm0, %v1120_v63, 0.0 }
 0x195   :  { %v1404_v26 = vadd.f32 %v1403_v9, %v1402_v15  ;;  %v1209_v30 = vadd.f32 %v1208_v20, %v1207_v16  ;;  %v1129_v15 = vld [vmem:[%s3026_s2 + $0x110] sm:$0xff] }
 0x196   :  { %v1405_v28 = vsel %vm33_vm0, %v1317_v10, 0.0 }
 0x197   :  { %v820_v5 = vpop.f32.mrb[56].mxu0  ;;  %v948_v7 = vpop.f32.mrb[56].mxu1  ;;  %v1406_v35 = vadd.f32 %v1405_v28, %v1404_v26  ;;  %v1326_v26 = vmul.f32 %v1129_v15, %v1129_v15 }
 0x198   :  { %v991_v11 = vadd.f32 %v820_v5, %v126_v0  ;;  %v822_v12 = vpop.f32.mrb[57].mxu0  ;;  %v1023_v13 = vadd.f32 %v948_v7, %v158_v1  ;;  %v950_v14 = vpop.f32.mrb[57].mxu1  ;;  %v1128_v7 = vld [vmem:[%s3026_s2 + $0x108] sm:$0xff] }
 0x199   :  { %v1121_v17 = vld [vmem:[%s3026_s2 + $0xd0] sm:$0xff]  ;;  %v823_v18 = vpop.f32.mrb[58].mxu0  ;;  %v951_v19 = vpop.f32.mrb[58].mxu1 }
 0x19a   :  { %v1318_v21 = vmul.f32 %v1121_v17, %v1121_v17  ;;  %1056 = vst.msk [vmem:[%s3026_s2 + $0xe0] sm:$0xff] %vm33_vm0, %v991_v11  ;;  %v992_v22 = vadd.f32 %v823_v18, %v127_v6  ;;  %v825_v23 = vpop.f32.mrb[59].mxu0  ;;  %1088 = vst.msk [vmem:[%s3026_s2 + $0x1e0] sm:$0xff] %vm33_vm0, %v1023_v13  ;;  %v1024_v24 = vadd.f32 %v951_v19, %v159_v8  ;;  %v953_v25 = vpop.f32.mrb[59].mxu1  ;;  %v1210_v29 = vsel %vm33_vm0, %v1121_v17, 0.0 }
 0x19b   :  { %v1122_v27 = vld [vmem:[%s3026_s2 + $0xd8] sm:$0xff]  ;;  %v1211_v36 = vadd.f32 %v1210_v29, %v1209_v30  ;;  %v1324_v11 = vmul.f32 %v1127_v2, %v1127_v2  ;;  %v1222_v18 = vsel %vm33_vm0, %v1127_v2, 0.0  ;;  %v1325_v19 = vmul.f32 %v1128_v7, %v1128_v7 }
 0x19c   :  { %1057 = vst.msk [vmem:[%s3026_s2 + $0xe8] sm:$0xff] %vm33_vm0, %v992_v22  ;;  %1089 = vst.msk [vmem:[%s3026_s2 + $0x1e8] sm:$0xff] %vm33_vm0, %v1024_v24  ;;  %v1319_v31 = vmul.f32 %v1122_v27, %v1122_v27  ;;  %v1407_v34 = vsel %vm33_vm0, %v1318_v21, 0.0  ;;  %v1212_v41 = vsel %vm33_vm0, %v1122_v27, 0.0  ;;  %v1130_v21 = vld [vmem:[%s3026_s2 + $0x118] sm:$0xff]  ;;  %v1224_v25 = vsel %vm33_vm0, %v1128_v7, 0.0 }
 0x19d   :  { %v1408_v46 = vadd.f32 %v1407_v34, %v1406_v35  ;;  %v1213_v57 = vadd.f32 %v1212_v41, %v1211_v36  ;;  %v1419_v24 = vsel %vm33_vm0, %v1324_v11, 0.0  ;;  %v1131_v27 = vld [vmem:[%s3026_s2 + $0x120] sm:$0xff]  ;;  %v1421_v30 = vsel %vm33_vm0, %v1325_v19, 0.0 }
 0x19e   :  { %v1409_v47 = vsel %vm33_vm0, %v1319_v31, 0.0  ;;  %v1226_v31 = vsel %vm33_vm0, %v1129_v15, 0.0  ;;  %v1423_v36 = vsel %vm33_vm0, %v1326_v26, 0.0  ;;  %v1139_v11 = vld [vmem:[%s3026_s2 + $0x160] sm:$0xff] }
 0x19f   :  { %v828_v37 = vpop.f32.mrb[60].mxu0  ;;  %v956_v39 = vpop.f32.mrb[60].mxu1  ;;  %v1410_v61 = vadd.f32 %v1409_v47, %v1408_v46 }
 0x1a0   :  { %v993_v42 = vadd.f32 %v828_v37, %v128_v32  ;;  %v830_v43 = vpop.f32.mrb[61].mxu0  ;;  %v1025_v44 = vadd.f32 %v956_v39, %v160_v33  ;;  %v958_v45 = vpop.f32.mrb[61].mxu1  ;;  %v1327_v32 = vmul.f32 %v1130_v21, %v1130_v21  ;;  %v1132_v33 = vld [vmem:[%s3026_s2 + $0x128] sm:$0xff]  ;;  %v1228_v37 = vsel %vm33_vm0, %v1130_v21, 0.0  ;;  %v1133_v39 = vld [vmem:[%s3026_s2 + $0x130] sm:$0xff] }
 0x1a1   :  { %v1123_v48 = vld [vmem:[%s3026_s2 + $0xe0] sm:$0xff]  ;;  %v831_v49 = vpop.f32.mrb[62].mxu0  ;;  %v959_v50 = vpop.f32.mrb[62].mxu1  ;;  %v1230_v43 = vsel %vm33_vm0, %v1131_v27, 0.0  ;;  %v1134_v45 = vld [vmem:[%s3026_s2 + $0x138] sm:$0xff] }
 0x1a2   :  { %v1214_v51 = vsel %vm33_vm0, %v1123_v48, 0.0  ;;  %v1320_v52 = vmul.f32 %v1123_v48, %v1123_v48  ;;  %1058 = vst.msk [vmem:[%s3026_s2 + $0xf0] sm:$0xff] %vm33_vm0, %v993_v42  ;;  %v994_v53 = vadd.f32 %v831_v49, %v129_v38  ;;  %v833_v54 = vpop.f32.mrb[63].mxu0  ;;  %1090 = vst.msk [vmem:[%s3026_s2 + $0x1f0] sm:$0xff] %vm33_vm0, %v1025_v44  ;;  %v1026_v55 = vadd.f32 %v959_v50, %v161_v40  ;;  %v961_v56 = vpop.f32.mrb[63].mxu1 }
 0x1a3   :  { %v1124_v58 = vld [vmem:[%s3026_s2 + $0xe8] sm:$0xff]  ;;  %v1215_v62 = vadd.f32 %v1214_v51, %v1213_v57  ;;  %v1328_v38 = vmul.f32 %v1131_v27, %v1131_v27  ;;  %v1425_v42 = vsel %vm33_vm0, %v1327_v32, 0.0  ;;  %v1329_v44 = vmul.f32 %v1132_v33, %v1132_v33  ;;  %v1135_v51 = vld [vmem:[%s3026_s2 + $0x140] sm:$0xff] }
 0x1a4   :  { %v1411_v59 = vsel %vm33_vm0, %v1320_v52, 0.0  ;;  %v1321_v60 = vmul.f32 %v1124_v58, %v1124_v58  ;;  %1059 = vst.msk [vmem:[%s3026_s2 + $0xf8] sm:$0xff] %vm33_vm0, %v994_v53  ;;  %1091 = vst.msk [vmem:[%s3026_s2 + $0x1f8] sm:$0xff] %vm33_vm0, %v1026_v55  ;;  %v1216_v63 = vsel %vm33_vm0, %v1124_v58, 0.0  ;;  %v1232_v49 = vsel %vm33_vm0, %v1132_v33, 0.0  ;;  %v1136_v57 = vld [vmem:[%s3026_s2 + $0x148] sm:$0xff] }
 0x1a5   :  { %v1412_v0 = vadd.f32 %v1411_v59, %v1410_v61  ;;  %v1217_v3 = vadd.f32 %v1216_v63, %v1215_v62  ;;  %v1427_v48 = vsel %vm33_vm0, %v1328_v38, 0.0  ;;  %v1330_v50 = vmul.f32 %v1133_v39, %v1133_v39  ;;  %v1137_v63 = vld [vmem:[%s3026_s2 + $0x150] sm:$0xff] }
 0x1a6   :  { %v1413_v1 = vsel %vm33_vm0, %v1321_v60, 0.0  ;;  %v1429_v54 = vsel %vm33_vm0, %v1329_v44, 0.0  ;;  %v1234_v55 = vsel %vm33_vm0, %v1133_v39, 0.0  ;;  %v1331_v56 = vmul.f32 %v1134_v45, %v1134_v45 }
 0x1a7   :  { %v1414_v8 = vadd.f32 %v1413_v1, %v1412_v0  ;;  %v1431_v60 = vsel %vm33_vm0, %v1330_v50, 0.0  ;;  %v1236_v61 = vsel %vm33_vm0, %v1134_v45, 0.0  ;;  %v1332_v62 = vmul.f32 %v1135_v51, %v1135_v51 }
 0x1a8   :  { %v1433_v2 = vsel %vm33_vm0, %v1331_v56, 0.0  ;;  %v1242_v15 = vsel %vm33_vm0, %v1137_v63, 0.0  ;;  %v1246_v27 = vsel %vm33_vm0, %v1139_v11, 0.0 }
 0x1a9   :  { %v1125_v4 = vld [vmem:[%s3026_s2 + $0xf0] sm:$0xff] }
 0x1aa   :  { %v1218_v5 = vsel %vm33_vm0, %v1125_v4, 0.0  ;;  %v1322_v6 = vmul.f32 %v1125_v4, %v1125_v4  ;;  %v1333_v4 = vmul.f32 %v1136_v57, %v1136_v57 }
 0x1ab   :  { %v1219_v9 = vadd.f32 %v1218_v5, %v1217_v3  ;;  %v1126_v10 = vld [vmem:[%s3026_s2 + $0xf8] sm:$0xff]  ;;  %v1238_v3 = vsel %vm33_vm0, %v1135_v51, 0.0 }
 0x1ac   :  { %v1415_v12 = vsel %vm33_vm0, %v1322_v6, 0.0  ;;  %v1220_v13 = vsel %vm33_vm0, %v1126_v10, 0.0  ;;  %v1323_v14 = vmul.f32 %v1126_v10, %v1126_v10  ;;  %v1138_v5 = vld [vmem:[%s3026_s2 + $0x158] sm:$0xff]  ;;  %v1334_v10 = vmul.f32 %v1137_v63, %v1137_v63 }
 0x1ad   :  { %v1416_v16 = vadd.f32 %v1415_v12, %v1414_v8  ;;  %v1221_v17 = vadd.f32 %v1220_v13, %v1219_v9  ;;  %v1435_v8 = vsel %vm33_vm0, %v1332_v62, 0.0  ;;  %v1240_v9 = vsel %vm33_vm0, %v1136_v57, 0.0 }
 0x1ae   :  { %v1417_v20 = vsel %vm33_vm0, %v1323_v14, 0.0  ;;  %v1437_v14 = vsel %vm33_vm0, %v1333_v4, 0.0  ;;  %v1244_v21 = vsel %vm33_vm0, %v1138_v5, 0.0 }
 0x1af   :  { %v1223_v22 = vadd.f32 %v1222_v18, %v1221_v17  ;;  %v1418_v23 = vadd.f32 %v1417_v20, %v1416_v16  ;;  %v1335_v16 = vmul.f32 %v1138_v5, %v1138_v5  ;;  %v1140_v17 = vld [vmem:[%s3026_s2 + $0x168] sm:$0xff]  ;;  %v1439_v20 = vsel %vm33_vm0, %v1334_v10, 0.0 }
 0x1b0   :  { %v1248_v33 = vsel %vm33_vm0, %v1140_v17, 0.0 }
 0x1b1   :  { %v1225_v28 = vadd.f32 %v1224_v25, %v1223_v22  ;;  %v1420_v29 = vadd.f32 %v1419_v24, %v1418_v23  ;;  %v1336_v22 = vmul.f32 %v1139_v11, %v1139_v11  ;;  %v1141_v23 = vld [vmem:[%s3026_s2 + $0x170] sm:$0xff]  ;;  %v1441_v26 = vsel %vm33_vm0, %v1335_v16, 0.0 }
 0x1b2   :  { %v1250_v39 = vsel %vm33_vm0, %v1141_v23, 0.0 }
 0x1b3   :  { %v1227_v34 = vadd.f32 %v1226_v31, %v1225_v28  ;;  %v1422_v35 = vadd.f32 %v1421_v30, %v1420_v29  ;;  %v1337_v28 = vmul.f32 %v1140_v17, %v1140_v17  ;;  %v1142_v29 = vld [vmem:[%s3026_s2 + $0x178] sm:$0xff]  ;;  %v1443_v32 = vsel %vm33_vm0, %v1336_v22, 0.0 }
 0x1b4   :  { %v1252_v45 = vsel %vm33_vm0, %v1142_v29, 0.0 }
 0x1b5   :  { %v1229_v40 = vadd.f32 %v1228_v37, %v1227_v34  ;;  %v1424_v41 = vadd.f32 %v1423_v36, %v1422_v35  ;;  %v1338_v34 = vmul.f32 %v1141_v23, %v1141_v23  ;;  %v1143_v35 = vld [vmem:[%s3026_s2 + $0x180] sm:$0xff]  ;;  %v1445_v38 = vsel %vm33_vm0, %v1337_v28, 0.0 }
 0x1b6   :  { %v1254_v51 = vsel %vm33_vm0, %v1143_v35, 0.0 }
 0x1b7   :  { %v1231_v46 = vadd.f32 %v1230_v43, %v1229_v40  ;;  %v1426_v47 = vadd.f32 %v1425_v42, %v1424_v41  ;;  %v1339_v40 = vmul.f32 %v1142_v29, %v1142_v29  ;;  %v1144_v43 = vld [vmem:[%s3026_s2 + $0x188] sm:$0xff]  ;;  %v1447_v44 = vsel %vm33_vm0, %v1338_v34, 0.0 }
 0x1b8   :  { %v1256_v57 = vsel %vm33_vm0, %v1144_v43, 0.0 }
 0x1b9   :  { %v1233_v52 = vadd.f32 %v1232_v49, %v1231_v46  ;;  %v1428_v53 = vadd.f32 %v1427_v48, %v1426_v47  ;;  %v1340_v46 = vmul.f32 %v1143_v35, %v1143_v35  ;;  %v1145_v49 = vld [vmem:[%s3026_s2 + $0x190] sm:$0xff]  ;;  %v1449_v50 = vsel %vm33_vm0, %v1339_v40, 0.0 }
 0x1ba   :  { %v1258_v63 = vsel %vm33_vm0, %v1145_v49, 0.0 }
 0x1bb   :  { %v1235_v58 = vadd.f32 %v1234_v55, %v1233_v52  ;;  %v1430_v59 = vadd.f32 %v1429_v54, %v1428_v53  ;;  %v1341_v52 = vmul.f32 %v1144_v43, %v1144_v43  ;;  %v1146_v55 = vld [vmem:[%s3026_s2 + $0x198] sm:$0xff]  ;;  %v1451_v56 = vsel %vm33_vm0, %v1340_v46, 0.0  ;;  %v1155_v43 = vld [vmem:[%s3026_s2 + $0x1e0] sm:$0xff] }
 0x1bc   :  { %v1260_v4 = vsel %vm33_vm0, %v1146_v55, 0.0 }
 0x1bd   :  { %v1237_v0 = vadd.f32 %v1236_v61, %v1235_v58  ;;  %v1432_v1 = vadd.f32 %v1431_v60, %v1430_v59  ;;  %v1342_v58 = vmul.f32 %v1145_v49, %v1145_v49  ;;  %v1147_v61 = vld [vmem:[%s3026_s2 + $0x1a0] sm:$0xff]  ;;  %v1453_v62 = vsel %vm33_vm0, %v1341_v52, 0.0  ;;  %v1156_v49 = vld [vmem:[%s3026_s2 + $0x1e8] sm:$0xff] }
 0x1be   :  { %v1344_v5 = vmul.f32 %v1147_v61, %v1147_v61  ;;  %v1262_v10 = vsel %vm33_vm0, %v1147_v61, 0.0 }
 0x1bf   :  { %v1434_v6 = vadd.f32 %v1433_v2, %v1432_v1  ;;  %v1239_v7 = vadd.f32 %v1238_v3, %v1237_v0  ;;  %v1343_v0 = vmul.f32 %v1146_v55, %v1146_v55  ;;  %v1148_v1 = vld [vmem:[%s3026_s2 + $0x1a8] sm:$0xff] }
 0x1c0   :  { %v1345_v11 = vmul.f32 %v1148_v1, %v1148_v1  ;;  %v1264_v16 = vsel %vm33_vm0, %v1148_v1, 0.0  ;;  %v1280_v1 = vsel %vm33_vm0, %v1156_v49, 0.0 }
 0x1c1   :  { %v1241_v12 = vadd.f32 %v1240_v9, %v1239_v7  ;;  %v1436_v13 = vadd.f32 %v1435_v8, %v1434_v6  ;;  %v1455_v6 = vsel %vm33_vm0, %v1342_v58, 0.0  ;;  %v1149_v7 = vld [vmem:[%s3026_s2 + $0x1b0] sm:$0xff]  ;;  %v1278_v58 = vsel %vm33_vm0, %v1155_v43, 0.0 }
 0x1c2   :  { %v1346_v17 = vmul.f32 %v1149_v7, %v1149_v7  ;;  %v1266_v22 = vsel %vm33_vm0, %v1149_v7, 0.0 }
 0x1c3   :  { %v1243_v18 = vadd.f32 %v1242_v15, %v1241_v12  ;;  %v1438_v19 = vadd.f32 %v1437_v14, %v1436_v13  ;;  %v1457_v12 = vsel %vm33_vm0, %v1343_v0, 0.0  ;;  %v1150_v13 = vld [vmem:[%s3026_s2 + $0x1b8] sm:$0xff] }
 0x1c4   :  { %v1347_v23 = vmul.f32 %v1150_v13, %v1150_v13  ;;  %v1268_v28 = vsel %vm33_vm0, %v1150_v13, 0.0 }
 0x1c5   :  { %v1245_v24 = vadd.f32 %v1244_v21, %v1243_v18  ;;  %v1440_v25 = vadd.f32 %v1439_v20, %v1438_v19  ;;  %v1459_v18 = vsel %vm33_vm0, %v1344_v5, 0.0  ;;  %v1151_v19 = vld [vmem:[%s3026_s2 + $0x1c0] sm:$0xff] }
 0x1c6   :  { %v1348_v29 = vmul.f32 %v1151_v19, %v1151_v19  ;;  %v1270_v34 = vsel %vm33_vm0, %v1151_v19, 0.0  ;;  %v1489_v19 = vlaneseq }
 0x1c7   :  { %v1247_v30 = vadd.f32 %v1246_v27, %v1245_v24  ;;  %v1442_v31 = vadd.f32 %v1441_v26, %v1440_v25  ;;  %v1461_v24 = vsel %vm33_vm0, %v1345_v11, 0.0  ;;  %v1152_v25 = vld [vmem:[%s3026_s2 + $0x1c8] sm:$0xff] }
 0x1c8   :  { %v1349_v35 = vmul.f32 %v1152_v25, %v1152_v25  ;;  %v1272_v40 = vsel %vm33_vm0, %v1152_v25, 0.0 }
 0x1c9   :  { %v1249_v36 = vadd.f32 %v1248_v33, %v1247_v30  ;;  %v1444_v37 = vadd.f32 %v1443_v32, %v1442_v31  ;;  %v1463_v30 = vsel %vm33_vm0, %v1346_v17, 0.0  ;;  %v1153_v31 = vld [vmem:[%s3026_s2 + $0x1d0] sm:$0xff] }
 0x1ca   :  { %v1274_v46 = vsel %vm33_vm0, %v1153_v31, 0.0 }
 0x1cb   :  { %v1251_v41 = vadd.f32 %v1250_v39, %v1249_v36  ;;  %v1446_v42 = vadd.f32 %v1445_v38, %v1444_v37  ;;  %v1465_v36 = vsel %vm33_vm0, %v1347_v23, 0.0  ;;  %v1154_v37 = vld [vmem:[%s3026_s2 + $0x1d8] sm:$0xff] }
 0x1cd   :  { %v1253_v47 = vadd.f32 %v1252_v45, %v1251_v41  ;;  %v1448_v48 = vadd.f32 %v1447_v44, %v1446_v42  ;;  %v1350_v41 = vmul.f32 %v1153_v31, %v1153_v31  ;;  %v1467_v42 = vsel %vm33_vm0, %v1348_v29, 0.0 }
 0x1cf   :  { %v1255_v53 = vadd.f32 %v1254_v51, %v1253_v47  ;;  %v1450_v54 = vadd.f32 %v1449_v50, %v1448_v48  ;;  %v1351_v47 = vmul.f32 %v1154_v37, %v1154_v37  ;;  %v1469_v48 = vsel %vm33_vm0, %v1349_v35, 0.0  ;;  %v1157_v50 = vld [vmem:[%s3026_s2 + $0x1f0] sm:$0xff] }
 0x1d0   :  { %v1471_v55 = vsel %vm33_vm0, %v1350_v41, 0.0 }
 0x1d1   :  { %v1452_v59 = vadd.f32 %v1451_v56, %v1450_v54  ;;  %v1257_v60 = vadd.f32 %v1256_v57, %v1255_v53  ;;  %v1276_v53 = vsel %vm33_vm0, %v1154_v37, 0.0  ;;  %v1352_v54 = vmul.f32 %v1155_v43, %v1155_v43 }
 0x1d2   :  { %v1473_v61 = vsel %vm33_vm0, %v1351_v47, 0.0 }
 0x1d3   :  { %v1259_v2 = vadd.f32 %v1258_v63, %v1257_v60  ;;  %v1454_v3 = vadd.f32 %v1453_v62, %v1452_v59  ;;  %v1353_v59 = vmul.f32 %v1156_v49, %v1156_v49  ;;  %v1354_v60 = vmul.f32 %v1157_v50, %v1157_v50  ;;  %v1158_v62 = vld [vmem:[%s3026_s2 + $0x1f8] sm:$0xff]  ;;  %s1798_s2 = smov [#allocation5]  }
 0x1d4   :  { %v1284_v11 = vsel %vm33_vm0, %v1158_v62, 0.0  ;;  %s1504_s20 = sshll.u32 %s1798_s2, 4  ;;  %s1505_s20 = int_to_ptr.vmem [resolvable:$true] %s1504_s20 }
 0x1d5   :  { %v1261_v8 = vadd.f32 %v1260_v4, %v1259_v2  ;;  %v1456_v9 = vadd.f32 %v1455_v6, %v1454_v3  ;;  %v1282_v2 = vsel %vm33_vm0, %v1157_v50, 0.0  ;;  %v1475_v3 = vsel %vm33_vm0, %v1352_v54, 0.0  ;;  %s1767_s21 = scalar_lea.vmem %s1505_s20, 128  ;;  %p1772_p9 = scmp.lt.s32.totalorder %s1505_s20, %s1505_s20 }
 0x1d6   :  { %v1355_v6 = vmul.f32 %v1158_v62, %v1158_v62  ;;  %v1477_v7 = vsel %vm33_vm0, %v1353_v59, 0.0  ;;  %p1768_p8 = scmp.ne.s32.totalorder %s1505_s20, %s1767_s21  ;;  %p1773_p10 = scmp.lt.s32.totalorder %s1767_s21, %s1767_s21 }
 0x1d7   :  { %v1263_v14 = vadd.f32 %v1262_v10, %v1261_v8  ;;  %v1458_v15 = vadd.f32 %v1457_v12, %v1456_v9  ;;  %v1479_v8 = vsel %vm33_vm0, %v1354_v60, 0.0 }
 0x1d8   :  { %p1774_p11 = por %p1773_p10, %p1772_p9 }
 0x1d9   :  { %v1265_v20 = vadd.f32 %v1264_v16, %v1263_v14  ;;  %v1460_v21 = vadd.f32 %v1459_v18, %v1458_v15  ;;  %v1481_v14 = vsel %vm33_vm0, %v1355_v6, 0.0 }
 0x1da   :  { %p1775_p12 = pnand %p1774_p11, %p1768_p8 }
 0x1db   :  { %v1267_v26 = vadd.f32 %v1266_v22, %v1265_v20  ;;  %v1462_v27 = vadd.f32 %v1461_v24, %v1460_v21  ;;  %v1490_v24 = vshrl.u32 %v1489_v19, 7 }
 0x1dd   :  { %v1269_v32 = vadd.f32 %v1268_v28, %v1267_v26  ;;  %v1464_v33 = vadd.f32 %v1463_v30, %v1462_v27  ;;  %vm1492_vm1 = vcmp.eq.s32.totalorder %v1490_v24, 1  ;;  %vm1491_vm2 = vcmp.eq.s32.totalorder %v1490_v24, 0 }
 0x1df   :  { %v1271_v38 = vadd.f32 %v1270_v34, %v1269_v32  ;;  %v1466_v39 = vadd.f32 %v1465_v36, %v1464_v33 }
 0x1e1   :  { %v1273_v44 = vadd.f32 %v1272_v40, %v1271_v38  ;;  %v1468_v45 = vadd.f32 %v1467_v42, %v1466_v39 }
 0x1e3   :  { %v1275_v51 = vadd.f32 %v1274_v46, %v1273_v44  ;;  %v1470_v52 = vadd.f32 %v1469_v48, %v1468_v45 }
 0x1e5   :  { %v1277_v56 = vadd.f32 %v1276_v53, %v1275_v51  ;;  %v1472_v57 = vadd.f32 %v1471_v55, %v1470_v52 }
 0x1e7   :  { %v1279_v63 = vadd.f32 %v1278_v58, %v1277_v56  ;;  %v1474_v0 = vadd.f32 %v1473_v61, %v1472_v57 }
 0x1e9   :  { %v1281_v4 = vadd.f32 %v1280_v1, %v1279_v63  ;;  %v1476_v5 = vadd.f32 %v1475_v3, %v1474_v0 }
 0x1eb   :  { %v1283_v9 = vadd.f32 %v1282_v2, %v1281_v4  ;;  %v1478_v10 = vadd.f32 %v1477_v7, %v1476_v5 }
 0x1ed   :  { %v1285_v12 = vadd.f32 %v1284_v11, %v1283_v9  ;;  %v1480_v13 = vadd.f32 %v1479_v8, %v1478_v10 }
 0x1ef   :  { %v1286_v15 = vrot.slane %v1285_v12, 4  ;;  %v1482_v16 = vadd.f32 %v1481_v14, %v1480_v13 }
 0x1f1   :  { %v1287_v17 = vadd.f32 %v1286_v15, %v1285_v12  ;;  %v1483_v18 = vrot.slane %v1482_v16, 4 }
 0x1f3   :  { %v1288_v20 = vrot.slane %v1287_v17, 2  ;;  %v1484_v21 = vadd.f32 %v1483_v18, %v1482_v16 }
 0x1f5   :  { %v1289_v22 = vadd.f32 %v1288_v20, %v1287_v17  ;;  %v1485_v23 = vrot.slane %v1484_v21, 2 }
 0x1f7   :  { %v1486_v25 = vadd.f32 %v1485_v23, %v1484_v21  ;;  %v1290_v26 = vrot.slane %v1289_v22, 1 }
 0x1f9   :  { %v1487_v27 = vrot.slane %v1486_v25, 1  ;;  %v1291_v29 = vadd.f32 %v1290_v26, %v1289_v22 }
 0x1fb   :  { %v1488_v28 = vadd.f32 %v1487_v27, %v1486_v25 }
 0x1fd   :  { %v1493_v30 = vsel %vm1492_vm1, %v1488_v28, 0.0 }
 0x1fe   :  { %v1494_v31 = vsel %vm1491_vm2, %v1291_v29, %v1493_v30 }
 0x1ff   :  { %1495 = vst.msk [vmem:[#allocation5] sm:$0xff] %vm33_vm0, %v1494_v31 }
 0x200   :  { %1778 = shalt.err (!%p1775_p12)
}
 0x201   :  { %s1779_s24 = scalar_lea.hbm %s3027_s3, 128 }
 0x202   :  { %p1780_p13 = scmp.ne.s32.totalorder %s3027_s3, %s1779_s24  ;;  %p1783_p0 = scmp.lt.u32.totalorder %s1779_s24, %s3027_s3 }
 0x204   :  { %p1785_p1 = pnand %p1783_p0, %p1780_p13 }
 0x206   :  { %1788 = shalt.err (!%p1785_p1)
}
 0x207   :  { %1507 = dma.vmem_to_hbm [thread:$0]  %s1505_s20, 128, %s3027_s3, [#allocation4]  }
 0x208   :  { %1791 = dma.done.wait [#allocation4], 128  }
 0x209   :  { %1792 = vsyncadd [#allocation4], 4294967168 }
 0x20a   :  { %1513 = vsyncpa [#allocation3], 1 }
 0x20b   :  { %1514 = vsyncpa [#allocation4], 1 }

</bundles_post_ra>
